<compile_context>
chip_gen: v6e
topology: v6e:2x2x1
jax: 0.10.0
libtpu: 0.0.40
codegen_flags: <defaults>
</compile_context>

<pallas_src>
import functools

import jax
import jax.numpy as jnp
from jax import lax
from jax.experimental import pallas as pl
from jax.experimental.pallas import tpu as pltpu


def _round_up(x, m):
    return ((x + m - 1) // m) * m


# ----------------------------- Pallas kernels -----------------------------

def _conv_kernel(p_ref, w_ref, b_ref, o_ref, *, apply_relu):
    """One dense matmul over the folded K*K*Cin contraction (+bias, +ReLU).

    p_ref: (1, tile_hw, KD)      bf16 im2col patches (KD = K*K*Cin)
    w_ref: (KD, Cout_pad)        bf16
    b_ref: (1, Cout_pad)         f32
    o_ref: (1, tile_hw, Cout_pad) f32  (lane-dense: Cout_pad % 128 == 0)
    """
    acc = jnp.dot(p_ref[0], w_ref[...], preferred_element_type=jnp.float32)
    acc = acc + b_ref[...]
    if apply_relu:
        acc = jnp.maximum(acc, 0.0)
    o_ref[0] = acc.astype(o_ref.dtype)


def _maxpool_kernel(p_ref, o_ref):
    """Elementwise max over K*K window positions on a lane-dense 2D tile.

    p_ref: (1, K*K, tile_r, 128)   o_ref: (1, tile_r, 128)
    """
    kt = p_ref.shape[1]
    m0 = p_ref[0, 0]
    m = lax.fori_loop(1, kt, lambda t, m: jnp.maximum(m, p_ref[0, t]),
                      m0, unroll=True)
    o_ref[0] = m.astype(o_ref.dtype)


# ------------------------------- glue (JAX) --------------------------------

def _window_slices(x_nhwc, ksize, stride, h_out, w_out):
    """All K*K strided window slices, each (N, H_out, W_out, C)."""
    n, _, _, c = x_nhwc.shape
    kh, kw = ksize
    out = []
    for ih in range(kh):
        for iw in range(kw):
            sl = lax.slice(
                x_nhwc,
                (0, ih, iw, 0),
                (n, ih + stride * (h_out - 1) + 1,
                 iw + stride * (w_out - 1) + 1, c),
                (1, stride, stride, 1))
            out.append(sl)
    return out


def conv2d_pallas(x_nhwc, w, b, *, stride, padding, relu):
    """Conv2d (+fused bias/ReLU): single folded-contraction MXU matmul."""
    kh, kw, cin, cout = w.shape
    n, h, wd, _ = x_nhwc.shape
    xp = jnp.pad(x_nhwc, ((0, 0), (padding, padding), (padding, padding), (0, 0)))
    h_out = (h + 2 * padding - kh) // stride + 1
    w_out = (wd + 2 * padding - kw) // stride + 1
    hw = h_out * w_out
    kd = kh * kw * cin

    # im2col -> (N, HW, K*K*Cin): window axis folded into the lane/contraction
    # dim, ordered (ih, iw, ci) to match w.reshape(kd, cout). bf16 operands
    # halve the (K*K-amplified) patch DMA bytes; accumulation stays f32.
    cols = [s.reshape(n, hw, cin)
            for s in _window_slices(xp, (kh, kw), stride, h_out, w_out)]
    patches = jnp.stack(cols, axis=2).reshape(n, hw, kd).astype(jnp.bfloat16)

    tile_hw = min(512, _round_up(hw, 16))       # sublane-aligned (bf16 packing)
    hw_pad = _round_up(hw, tile_hw)
    cout_pad = _round_up(cout, 128)             # lane-dense output stores

    patches = jnp.pad(patches, ((0, 0), (0, hw_pad - hw), (0, 0)))
    wf = jnp.pad(w.reshape(kd, cout).astype(jnp.bfloat16),
                 ((0, 0), (0, cout_pad - cout)))
    bf = jnp.pad(b, (0, cout_pad - cout)).reshape(1, cout_pad).astype(jnp.float32)

    grid = (n, hw_pad // tile_hw)
    out = pl.pallas_call(
        functools.partial(_conv_kernel, apply_relu=relu),
        out_shape=jax.ShapeDtypeStruct((n, hw_pad, cout_pad), jnp.float32),
        grid=grid,
        in_specs=[
            pl.BlockSpec((1, tile_hw, kd), lambda i, t: (i, t, 0)),
            pl.BlockSpec((kd, cout_pad), lambda i, t: (0, 0)),   # VMEM-resident
            pl.BlockSpec((1, cout_pad), lambda i, t: (0, 0)),
        ],
        out_specs=pl.BlockSpec((1, tile_hw, cout_pad), lambda i, t: (i, t, 0)),
        compiler_params=pltpu.CompilerParams(
            dimension_semantics=("parallel", "parallel"),
            vmem_limit_bytes=32 * 1024 * 1024),
    )(patches, wf, bf)

    out = out[:, :hw, :cout].reshape(n, h_out, w_out, cout)
    return out.astype(x_nhwc.dtype)


def maxpool2d_pallas(x_nhwc, *, ksize=3, stride=2):
    """MaxPool2d(kernel=3, stride=2) on a lane-dense flattened layout."""
    n, h, wd, c = x_nhwc.shape
    h_out = (h - ksize) // stride + 1
    w_out = (wd - ksize) // stride + 1
    hw = h_out * w_out
    kt = ksize * ksize

    # (N, K*K, HW*C): the reduction is purely elementwise over the K*K axis,
    # so the (pixel, channel) pair is flattened into one lane-dense axis.
    cols = [s.reshape(n, hw * c)
            for s in _window_slices(x_nhwc, (ksize, ksize), stride, h_out, w_out)]
    patches = jnp.stack(cols, axis=1)                     # (N, KT, L)

    L = hw * c
    rows = _round_up(L, 128) // 128
    tile_r = min(256, _round_up(rows, 8))
    rows_pad = _round_up(rows, tile_r)
    l_pad = rows_pad * 128

    patches = jnp.pad(patches, ((0, 0), (0, 0), (0, l_pad - L)))
    patches = patches.reshape(n, kt, rows_pad, 128)

    grid = (n, rows_pad // tile_r)
    out = pl.pallas_call(
        _maxpool_kernel,
        out_shape=jax.ShapeDtypeStruct((n, rows_pad, 128), x_nhwc.dtype),
        grid=grid,
        in_specs=[pl.BlockSpec((1, kt, tile_r, 128), lambda i, t: (i, 0, t, 0))],
        out_specs=pl.BlockSpec((1, tile_r, 128), lambda i, t: (i, t, 0)),
        compiler_params=pltpu.CompilerParams(
            dimension_semantics=("parallel", "parallel"),
            vmem_limit_bytes=32 * 1024 * 1024),
    )(patches)

    return out.reshape(n, rows_pad * 128)[:, :L].reshape(n, h_out, w_out, c)


# ------------------------- ExtractorWrapper forward -------------------------

def extractor_forward(x_nchw, params):
    """Sequential layer0..layer12 (ReLU layers fused into preceding conv)."""
    (w0, b0), (w3, b3), (w6, b6), (w8, b8), (w10, b10) = params
    x = jnp.transpose(x_nchw, (0, 2, 3, 1))                        # NCHW -> NHWC
    x = conv2d_pallas(x, w0, b0, stride=4, padding=2, relu=True)   # layer0 + layer1
    x = maxpool2d_pallas(x)                                        # layer2
    x = conv2d_pallas(x, w3, b3, stride=1, padding=2, relu=True)   # layer3 + layer4
    x = maxpool2d_pallas(x)                                        # layer5
    x = conv2d_pallas(x, w6, b6, stride=1, padding=1, relu=True)   # layer6 + layer7
    x = conv2d_pallas(x, w8, b8, stride=1, padding=1, relu=True)   # layer8 + layer9
    x = conv2d_pallas(x, w10, b10, stride=1, padding=1, relu=True) # layer10 + layer11
    x = maxpool2d_pallas(x)                                        # layer12
    return jnp.transpose(x, (0, 3, 1, 2))                          # NHWC -> NCHW


# ----------------------------- plain-JAX reference --------------------------

def _bf16_round(x):
    # The Pallas path feeds bf16 operands to the MXU; emulate that quantization
    # so the reference differs only by accumulation order.
    return x.astype(jnp.bfloat16).astype(jnp.float32)


def _ref_conv(x, w, b, stride, padding, relu):
    out = lax.conv_general_dilated(
        _bf16_round(x), _bf16_round(w), (stride, stride),
        [(padding, padding), (padding, padding)],
        dimension_numbers=("NHWC", "HWIO", "NHWC"),
        preferred_element_type=jnp.float32)
    out = out + b.reshape(1, 1, 1, -1)
    return jnp.maximum(out, 0.0) if relu else out


def _ref_pool(x, k=3, s=2):
    return lax.reduce_window(x, -jnp.inf, lax.max,
                             (1, k, k, 1), (1, s, s, 1), "VALID")


def reference_forward(x_nchw, params):
    (w0, b0), (w3, b3), (w6, b6), (w8, b8), (w10, b10) = params
    x = jnp.transpose(x_nchw, (0, 2, 3, 1))
    x = _ref_conv(x, w0, b0, 4, 2, True)
    x = _ref_pool(x)
    x = _ref_conv(x, w3, b3, 1, 2, True)
    x = _ref_pool(x)
    x = _ref_conv(x, w6, b6, 1, 1, True)
    x = _ref_conv(x, w8, b8, 1, 1, True)
    x = _ref_conv(x, w10, b10, 1, 1, True)
    x = _ref_pool(x)
    return jnp.transpose(x, (0, 3, 1, 2))


# --------------------------------- main -------------------------------------

def _init_conv(key, kh, kw, cin, cout):
    kw_key, kb_key = jax.random.split(key)
    bound = 1.0 / float(cin * kh * kw) ** 0.5          # PyTorch default-style init
    w = jax.random.uniform(kw_key, (kh, kw, cin, cout), jnp.float32, -bound, bound)
    b = jax.random.uniform(kb_key, (cout,), jnp.float32, -bound, bound)
    return w, b


if __name__ == "__main__":
    key = jax.random.PRNGKey(0)
    kx, k0, k3, k6, k8, k10 = jax.random.split(key, 6)

    # Downscaled AlexNet-features channel counts (synthetic, deterministic).
    C1, C2, C3, C4, C5 = 16, 32, 48, 32, 32
    params = (
        _init_conv(k0, 11, 11, 3, C1),    # layer0
        _init_conv(k3, 5, 5, C1, C2),     # layer3
        _init_conv(k6, 3, 3, C2, C3),     # layer6
        _init_conv(k8, 3, 3, C3, C4),     # layer8
        _init_conv(k10, 3, 3, C4, C5),    # layer10
    )

    x = jax.random.normal(kx, (2, 3, 64, 64), jnp.float32)   # NCHW, like PyTorch

    out = jax.jit(extractor_forward)(x, params)
    out = jax.block_until_ready(out)

    ref = reference_forward(x, params)
    assert out.shape == ref.shape == (2, C5, 1, 1), (out.shape, ref.shape)
    if not jnp.allclose(out, ref, rtol=1e-2, atol=1e-2):
        raise SystemExit(
            f"mismatch: max abs err = {float(jnp.max(jnp.abs(out - ref)))}")
    print("KERNEL_OK")
</pallas_src>

<mosaic_0001>
module attributes {stable_mosaic.version = 11 : i64} {
  func.func @_conv_kernel(%arg0: i32, %arg1: i32, %arg2: memref<1x240x363xbf16, #tpu.memory_space<vmem>>, %arg3: memref<363x128xbf16, #tpu.memory_space<vmem>>, %arg4: memref<1x128xf32, #tpu.memory_space<vmem>>, %arg5: memref<1x240x128xf32, #tpu.memory_space<vmem>>) attributes {dimension_semantics = [#tpu.dimension_semantics<parallel>, #tpu.dimension_semantics<parallel>], iteration_bounds = array<i64: 2, 1>, scalar_prefetch = 0 : i64, scratch_operands = 0 : i64, tpu.core_type = #tpu.core_type<tc>, window_params = [{transform_indices = @transform_0, window_bounds = array<i64: 1, 240, 363>}, {pipeline_mode = #tpu.pipeline_mode<synchronous>, transform_indices = @transform_1, window_bounds = array<i64: 363, 128>}, {pipeline_mode = #tpu.pipeline_mode<synchronous>, transform_indices = @transform_2, window_bounds = array<i64: 1, 128>}, {transform_indices = @transform_3, window_bounds = array<i64: 1, 240, 128>}]} {
    %c0 = arith.constant 0 : index
    %c0_0 = arith.constant 0 : index
    %c0_1 = arith.constant 0 : index
    %0 = vector.load %arg2[%c0, %c0_0, %c0_1] : memref<1x240x363xbf16, #tpu.memory_space<vmem>>, vector<1x240x363xbf16>
    %1 = vector.shape_cast %0 : vector<1x240x363xbf16> to vector<240x363xbf16>
    %c0_2 = arith.constant 0 : index
    %c0_3 = arith.constant 0 : index
    %2 = vector.load %arg3[%c0_2, %c0_3] : memref<363x128xbf16, #tpu.memory_space<vmem>>, vector<363x128xbf16>
    %cst = arith.constant dense<0.000000e+00> : vector<240x128xf32>
    %3 = tpu.matmul %1, %2, %cst {dimension_numbers = #tpu.dot_dimension_numbers<[1], [0], [0], [1], [0, 0, 1, 1], [], []>} : vector<240x363xbf16>, vector<363x128xbf16>, vector<240x128xf32> -> vector<240x128xf32>
    %c0_4 = arith.constant 0 : index
    %c0_5 = arith.constant 0 : index
    %4 = vector.load %arg4[%c0_4, %c0_5] : memref<1x128xf32, #tpu.memory_space<vmem>>, vector<1x128xf32>
    %5 = vector.broadcast %4 : vector<1x128xf32> to vector<240x128xf32>
    %6 = arith.addf %3, %5 : vector<240x128xf32>
    %cst_6 = arith.constant 0.000000e+00 : f32
    %7 = vector.broadcast %cst_6 : f32 to vector<240x128xf32>
    %8 = arith.maximumf %6, %7 : vector<240x128xf32>
    %c0_7 = arith.constant 0 : index
    %c0_8 = arith.constant 0 : index
    %c0_9 = arith.constant 0 : index
    %9 = vector.load %arg5[%c0_7, %c0_8, %c0_9] : memref<1x240x128xf32, #tpu.memory_space<vmem>>, vector<1x240x128xf32>
    %10 = vector.shape_cast %9 : vector<1x240x128xf32> to vector<240x128xf32>
    %11 = vector.shape_cast %8 : vector<240x128xf32> to vector<1x240x128xf32>
    tpu.vector_store %arg5[%c0_7, %c0_8, %c0_9], %11 {strides = array<i32>} : memref<1x240x128xf32, #tpu.memory_space<vmem>>, vector<1x240x128xf32>,
    return
  }
  func.func @transform_0(%arg0: i32, %arg1: i32) -> (i32, i32, i32) {
    %c0_i32 = arith.constant 0 : i32
    %c0_i32_0 = arith.constant 0 : i32
    return %arg0, %arg1, %c0_i32 : i32, i32, i32
  }
  func.func @transform_1(%arg0: i32, %arg1: i32) -> (i32, i32) {
    %c0_i32 = arith.constant 0 : i32
    %c0_i32_0 = arith.constant 0 : i32
    %c0_i32_1 = arith.constant 0 : i32
    return %c0_i32, %c0_i32_0 : i32, i32
  }
  func.func @transform_2(%arg0: i32, %arg1: i32) -> (i32, i32) {
    %c0_i32 = arith.constant 0 : i32
    %c0_i32_0 = arith.constant 0 : i32
    %c0_i32_1 = arith.constant 0 : i32
    return %c0_i32, %c0_i32_0 : i32, i32
  }
  func.func @transform_3(%arg0: i32, %arg1: i32) -> (i32, i32, i32) {
    %c0_i32 = arith.constant 0 : i32
    %c0_i32_0 = arith.constant 0 : i32
    return %arg0, %arg1, %c0_i32 : i32, i32, i32
  }
}

module attributes {stable_mosaic.version = 11 : i64} {
  func.func @_maxpool_kernel(%arg0: i32, %arg1: i32, %arg2: memref<1x9x8x128xf32, #tpu.memory_space<vmem>>, %arg3: memref<1x8x128xf32, #tpu.memory_space<vmem>>) attributes {dimension_semantics = [#tpu.dimension_semantics<parallel>, #tpu.dimension_semantics<parallel>], iteration_bounds = array<i64: 2, 1>, scalar_prefetch = 0 : i64, scratch_operands = 0 : i64, tpu.core_type = #tpu.core_type<tc>, window_params = [{transform_indices = @transform_0, window_bounds = array<i64: 1, 9, 8, 128>}, {transform_indices = @transform_1, window_bounds = array<i64: 1, 8, 128>}]} {
    %c0 = arith.constant 0 : index
    %c0_0 = arith.constant 0 : index
    %c0_1 = arith.constant 0 : index
    %c0_2 = arith.constant 0 : index
    %0 = vector.load %arg2[%c0, %c0_0, %c0_1, %c0_2] : memref<1x9x8x128xf32, #tpu.memory_space<vmem>>, vector<1x1x8x128xf32>
    %1 = vector.shape_cast %0 : vector<1x1x8x128xf32> to vector<8x128xf32>
    %c1_i32 = arith.constant 1 : i32
    %c0_3 = arith.constant 0 : index
    %2 = arith.index_cast %c1_i32 : i32 to index
    %c0_4 = arith.constant 0 : index
    %c0_5 = arith.constant 0 : index
    %3 = vector.load %arg2[%c0_3, %2, %c0_4, %c0_5] : memref<1x9x8x128xf32, #tpu.memory_space<vmem>>, vector<1x1x8x128xf32>
    %4 = vector.shape_cast %3 : vector<1x1x8x128xf32> to vector<8x128xf32>
    %5 = arith.maximumf %1, %4 : vector<8x128xf32>
    %c2_i32 = arith.constant 2 : i32
    %c0_6 = arith.constant 0 : index
    %6 = arith.index_cast %c2_i32 : i32 to index
    %c0_7 = arith.constant 0 : index
    %c0_8 = arith.constant 0 : index
    %7 = vector.load %arg2[%c0_6, %6, %c0_7, %c0_8] : memref<1x9x8x128xf32, #tpu.memory_space<vmem>>, vector<1x1x8x128xf32>
    %8 = vector.shape_cast %7 : vector<1x1x8x128xf32> to vector<8x128xf32>
    %9 = arith.maximumf %5, %8 : vector<8x128xf32>
    %c3_i32 = arith.constant 3 : i32
    %c0_9 = arith.constant 0 : index
    %10 = arith.index_cast %c3_i32 : i32 to index
    %c0_10 = arith.constant 0 : index
    %c0_11 = arith.constant 0 : index
    %11 = vector.load %arg2[%c0_9, %10, %c0_10, %c0_11] : memref<1x9x8x128xf32, #tpu.memory_space<vmem>>, vector<1x1x8x128xf32>
    %12 = vector.shape_cast %11 : vector<1x1x8x128xf32> to vector<8x128xf32>
    %13 = arith.maximumf %9, %12 : vector<8x128xf32>
    %c4_i32 = arith.constant 4 : i32
    %c0_12 = arith.constant 0 : index
    %14 = arith.index_cast %c4_i32 : i32 to index
    %c0_13 = arith.constant 0 : index
    %c0_14 = arith.constant 0 : index
    %15 = vector.load %arg2[%c0_12, %14, %c0_13, %c0_14] : memref<1x9x8x128xf32, #tpu.memory_space<vmem>>, vector<1x1x8x128xf32>
    %16 = vector.shape_cast %15 : vector<1x1x8x128xf32> to vector<8x128xf32>
    %17 = arith.maximumf %13, %16 : vector<8x128xf32>
    %c5_i32 = arith.constant 5 : i32
    %c0_15 = arith.constant 0 : index
    %18 = arith.index_cast %c5_i32 : i32 to index
    %c0_16 = arith.constant 0 : index
    %c0_17 = arith.constant 0 : index
    %19 = vector.load %arg2[%c0_15, %18, %c0_16, %c0_17] : memref<1x9x8x128xf32, #tpu.memory_space<vmem>>, vector<1x1x8x128xf32>
    %20 = vector.shape_cast %19 : vector<1x1x8x128xf32> to vector<8x128xf32>
    %21 = arith.maximumf %17, %20 : vector<8x128xf32>
    %c6_i32 = arith.constant 6 : i32
    %c0_18 = arith.constant 0 : index
    %22 = arith.index_cast %c6_i32 : i32 to index
    %c0_19 = arith.constant 0 : index
    %c0_20 = arith.constant 0 : index
    %23 = vector.load %arg2[%c0_18, %22, %c0_19, %c0_20] : memref<1x9x8x128xf32, #tpu.memory_space<vmem>>, vector<1x1x8x128xf32>
    %24 = vector.shape_cast %23 : vector<1x1x8x128xf32> to vector<8x128xf32>
    %25 = arith.maximumf %21, %24 : vector<8x128xf32>
    %c7_i32 = arith.constant 7 : i32
    %c0_21 = arith.constant 0 : index
    %26 = arith.index_cast %c7_i32 : i32 to index
    %c0_22 = arith.constant 0 : index
    %c0_23 = arith.constant 0 : index
    %27 = vector.load %arg2[%c0_21, %26, %c0_22, %c0_23] : memref<1x9x8x128xf32, #tpu.memory_space<vmem>>, vector<1x1x8x128xf32>
    %28 = vector.shape_cast %27 : vector<1x1x8x128xf32> to vector<8x128xf32>
    %29 = arith.maximumf %25, %28 : vector<8x128xf32>
    %c8_i32 = arith.constant 8 : i32
    %c0_24 = arith.constant 0 : index
    %30 = arith.index_cast %c8_i32 : i32 to index
    %c0_25 = arith.constant 0 : index
    %c0_26 = arith.constant 0 : index
    %31 = vector.load %arg2[%c0_24, %30, %c0_25, %c0_26] : memref<1x9x8x128xf32, #tpu.memory_space<vmem>>, vector<1x1x8x128xf32>
    %32 = vector.shape_cast %31 : vector<1x1x8x128xf32> to vector<8x128xf32>
    %33 = arith.maximumf %29, %32 : vector<8x128xf32>
    %c8_i32_27 = arith.constant 8 : i32
    %c0_28 = arith.constant 0 : index
    %c0_29 = arith.constant 0 : index
    %c0_30 = arith.constant 0 : index
    %34 = vector.load %arg3[%c0_28, %c0_29, %c0_30] : memref<1x8x128xf32, #tpu.memory_space<vmem>>, vector<1x8x128xf32>
    %35 = vector.shape_cast %34 : vector<1x8x128xf32> to vector<8x128xf32>
    %36 = vector.shape_cast %33 : vector<8x128xf32> to vector<1x8x128xf32>
    tpu.vector_store %arg3[%c0_28, %c0_29, %c0_30], %36 {strides = array<i32>} : memref<1x8x128xf32, #tpu.memory_space<vmem>>, vector<1x8x128xf32>,
    return
  }
  func.func @transform_0(%arg0: i32, %arg1: i32) -> (i32, i32, i32, i32) {
    %c0_i32 = arith.constant 0 : i32
    %c0_i32_0 = arith.constant 0 : i32
    %c0_i32_1 = arith.constant 0 : i32
    return %arg0, %c0_i32, %arg1, %c0_i32_0 : i32, i32, i32, i32
  }
  func.func @transform_1(%arg0: i32, %arg1: i32) -> (i32, i32, i32) {
    %c0_i32 = arith.constant 0 : i32
    %c0_i32_0 = arith.constant 0 : i32
    return %arg0, %arg1, %c0_i32 : i32, i32, i32
  }
}

module attributes {stable_mosaic.version = 11 : i64} {
  func.func @_conv_kernel(%arg0: i32, %arg1: i32, %arg2: memref<1x64x400xbf16, #tpu.memory_space<vmem>>, %arg3: memref<400x128xbf16, #tpu.memory_space<vmem>>, %arg4: memref<1x128xf32, #tpu.memory_space<vmem>>, %arg5: memref<1x64x128xf32, #tpu.memory_space<vmem>>) attributes {dimension_semantics = [#tpu.dimension_semantics<parallel>, #tpu.dimension_semantics<parallel>], iteration_bounds = array<i64: 2, 1>, scalar_prefetch = 0 : i64, scratch_operands = 0 : i64, tpu.core_type = #tpu.core_type<tc>, window_params = [{transform_indices = @transform_0, window_bounds = array<i64: 1, 64, 400>}, {pipeline_mode = #tpu.pipeline_mode<synchronous>, transform_indices = @transform_1, window_bounds = array<i64: 400, 128>}, {pipeline_mode = #tpu.pipeline_mode<synchronous>, transform_indices = @transform_2, window_bounds = array<i64: 1, 128>}, {transform_indices = @transform_3, window_bounds = array<i64: 1, 64, 128>}]} {
    %c0 = arith.constant 0 : index
    %c0_0 = arith.constant 0 : index
    %c0_1 = arith.constant 0 : index
    %0 = vector.load %arg2[%c0, %c0_0, %c0_1] : memref<1x64x400xbf16, #tpu.memory_space<vmem>>, vector<1x64x400xbf16>
    %1 = vector.shape_cast %0 : vector<1x64x400xbf16> to vector<64x400xbf16>
    %c0_2 = arith.constant 0 : index
    %c0_3 = arith.constant 0 : index
    %2 = vector.load %arg3[%c0_2, %c0_3] : memref<400x128xbf16, #tpu.memory_space<vmem>>, vector<400x128xbf16>
    %cst = arith.constant dense<0.000000e+00> : vector<64x128xf32>
    %3 = tpu.matmul %1, %2, %cst {dimension_numbers = #tpu.dot_dimension_numbers<[1], [0], [0], [1], [0, 0, 1, 1], [], []>} : vector<64x400xbf16>, vector<400x128xbf16>, vector<64x128xf32> -> vector<64x128xf32>
    %c0_4 = arith.constant 0 : index
    %c0_5 = arith.constant 0 : index
    %4 = vector.load %arg4[%c0_4, %c0_5] : memref<1x128xf32, #tpu.memory_space<vmem>>, vector<1x128xf32>
    %5 = vector.broadcast %4 : vector<1x128xf32> to vector<64x128xf32>
    %6 = arith.addf %3, %5 : vector<64x128xf32>
    %cst_6 = arith.constant 0.000000e+00 : f32
    %7 = vector.broadcast %cst_6 : f32 to vector<64x128xf32>
    %8 = arith.maximumf %6, %7 : vector<64x128xf32>
    %c0_7 = arith.constant 0 : index
    %c0_8 = arith.constant 0 : index
    %c0_9 = arith.constant 0 : index
    %9 = vector.load %arg5[%c0_7, %c0_8, %c0_9] : memref<1x64x128xf32, #tpu.memory_space<vmem>>, vector<1x64x128xf32>
    %10 = vector.shape_cast %9 : vector<1x64x128xf32> to vector<64x128xf32>
    %11 = vector.shape_cast %8 : vector<64x128xf32> to vector<1x64x128xf32>
    tpu.vector_store %arg5[%c0_7, %c0_8, %c0_9], %11 {strides = array<i32>} : memref<1x64x128xf32, #tpu.memory_space<vmem>>, vector<1x64x128xf32>,
    return
  }
  func.func @transform_0(%arg0: i32, %arg1: i32) -> (i32, i32, i32) {
    %c0_i32 = arith.constant 0 : i32
    %c0_i32_0 = arith.constant 0 : i32
    return %arg0, %arg1, %c0_i32 : i32, i32, i32
  }
  func.func @transform_1(%arg0: i32, %arg1: i32) -> (i32, i32) {
    %c0_i32 = arith.constant 0 : i32
    %c0_i32_0 = arith.constant 0 : i32
    %c0_i32_1 = arith.constant 0 : i32
    return %c0_i32, %c0_i32_0 : i32, i32
  }
  func.func @transform_2(%arg0: i32, %arg1: i32) -> (i32, i32) {
    %c0_i32 = arith.constant 0 : i32
    %c0_i32_0 = arith.constant 0 : i32
    %c0_i32_1 = arith.constant 0 : i32
    return %c0_i32, %c0_i32_0 : i32, i32
  }
  func.func @transform_3(%arg0: i32, %arg1: i32) -> (i32, i32, i32) {
    %c0_i32 = arith.constant 0 : i32
    %c0_i32_0 = arith.constant 0 : i32
    return %arg0, %arg1, %c0_i32 : i32, i32, i32
  }
}

module attributes {stable_mosaic.version = 11 : i64} {
  func.func @_conv_kernel(%arg0: i32, %arg1: i32, %arg2: memref<1x16x288xbf16, #tpu.memory_space<vmem>>, %arg3: memref<288x128xbf16, #tpu.memory_space<vmem>>, %arg4: memref<1x128xf32, #tpu.memory_space<vmem>>, %arg5: memref<1x16x128xf32, #tpu.memory_space<vmem>>) attributes {dimension_semantics = [#tpu.dimension_semantics<parallel>, #tpu.dimension_semantics<parallel>], iteration_bounds = array<i64: 2, 1>, scalar_prefetch = 0 : i64, scratch_operands = 0 : i64, tpu.core_type = #tpu.core_type<tc>, window_params = [{transform_indices = @transform_0, window_bounds = array<i64: 1, 16, 288>}, {pipeline_mode = #tpu.pipeline_mode<synchronous>, transform_indices = @transform_1, window_bounds = array<i64: 288, 128>}, {pipeline_mode = #tpu.pipeline_mode<synchronous>, transform_indices = @transform_2, window_bounds = array<i64: 1, 128>}, {transform_indices = @transform_3, window_bounds = array<i64: 1, 16, 128>}]} {
    %c0 = arith.constant 0 : index
    %c0_0 = arith.constant 0 : index
    %c0_1 = arith.constant 0 : index
    %0 = vector.load %arg2[%c0, %c0_0, %c0_1] : memref<1x16x288xbf16, #tpu.memory_space<vmem>>, vector<1x16x288xbf16>
    %1 = vector.shape_cast %0 : vector<1x16x288xbf16> to vector<16x288xbf16>
    %c0_2 = arith.constant 0 : index
    %c0_3 = arith.constant 0 : index
    %2 = vector.load %arg3[%c0_2, %c0_3] : memref<288x128xbf16, #tpu.memory_space<vmem>>, vector<288x128xbf16>
    %cst = arith.constant dense<0.000000e+00> : vector<16x128xf32>
    %3 = tpu.matmul %1, %2, %cst {dimension_numbers = #tpu.dot_dimension_numbers<[1], [0], [0], [1], [0, 0, 1, 1], [], []>} : vector<16x288xbf16>, vector<288x128xbf16>, vector<16x128xf32> -> vector<16x128xf32>
    %c0_4 = arith.constant 0 : index
    %c0_5 = arith.constant 0 : index
    %4 = vector.load %arg4[%c0_4, %c0_5] : memref<1x128xf32, #tpu.memory_space<vmem>>, vector<1x128xf32>
    %5 = vector.broadcast %4 : vector<1x128xf32> to vector<16x128xf32>
    %6 = arith.addf %3, %5 : vector<16x128xf32>
    %cst_6 = arith.constant 0.000000e+00 : f32
    %7 = vector.broadcast %cst_6 : f32 to vector<16x128xf32>
    %8 = arith.maximumf %6, %7 : vector<16x128xf32>
    %c0_7 = arith.constant 0 : index
    %c0_8 = arith.constant 0 : index
    %c0_9 = arith.constant 0 : index
    %9 = vector.load %arg5[%c0_7, %c0_8, %c0_9] : memref<1x16x128xf32, #tpu.memory_space<vmem>>, vector<1x16x128xf32>
    %10 = vector.shape_cast %9 : vector<1x16x128xf32> to vector<16x128xf32>
    %11 = vector.shape_cast %8 : vector<16x128xf32> to vector<1x16x128xf32>
    tpu.vector_store %arg5[%c0_7, %c0_8, %c0_9], %11 {strides = array<i32>} : memref<1x16x128xf32, #tpu.memory_space<vmem>>, vector<1x16x128xf32>,
    return
  }
  func.func @transform_0(%arg0: i32, %arg1: i32) -> (i32, i32, i32) {
    %c0_i32 = arith.constant 0 : i32
    %c0_i32_0 = arith.constant 0 : i32
    return %arg0, %arg1, %c0_i32 : i32, i32, i32
  }
  func.func @transform_1(%arg0: i32, %arg1: i32) -> (i32, i32) {
    %c0_i32 = arith.constant 0 : i32
    %c0_i32_0 = arith.constant 0 : i32
    %c0_i32_1 = arith.constant 0 : i32
    return %c0_i32, %c0_i32_0 : i32, i32
  }
  func.func @transform_2(%arg0: i32, %arg1: i32) -> (i32, i32) {
    %c0_i32 = arith.constant 0 : i32
    %c0_i32_0 = arith.constant 0 : i32
    %c0_i32_1 = arith.constant 0 : i32
    return %c0_i32, %c0_i32_0 : i32, i32
  }
  func.func @transform_3(%arg0: i32, %arg1: i32) -> (i32, i32, i32) {
    %c0_i32 = arith.constant 0 : i32
    %c0_i32_0 = arith.constant 0 : i32
    return %arg0, %arg1, %c0_i32 : i32, i32, i32
  }
}

module attributes {stable_mosaic.version = 11 : i64} {
  func.func @_conv_kernel(%arg0: i32, %arg1: i32, %arg2: memref<1x16x432xbf16, #tpu.memory_space<vmem>>, %arg3: memref<432x128xbf16, #tpu.memory_space<vmem>>, %arg4: memref<1x128xf32, #tpu.memory_space<vmem>>, %arg5: memref<1x16x128xf32, #tpu.memory_space<vmem>>) attributes {dimension_semantics = [#tpu.dimension_semantics<parallel>, #tpu.dimension_semantics<parallel>], iteration_bounds = array<i64: 2, 1>, scalar_prefetch = 0 : i64, scratch_operands = 0 : i64, tpu.core_type = #tpu.core_type<tc>, window_params = [{transform_indices = @transform_0, window_bounds = array<i64: 1, 16, 432>}, {pipeline_mode = #tpu.pipeline_mode<synchronous>, transform_indices = @transform_1, window_bounds = array<i64: 432, 128>}, {pipeline_mode = #tpu.pipeline_mode<synchronous>, transform_indices = @transform_2, window_bounds = array<i64: 1, 128>}, {transform_indices = @transform_3, window_bounds = array<i64: 1, 16, 128>}]} {
    %c0 = arith.constant 0 : index
    %c0_0 = arith.constant 0 : index
    %c0_1 = arith.constant 0 : index
    %0 = vector.load %arg2[%c0, %c0_0, %c0_1] : memref<1x16x432xbf16, #tpu.memory_space<vmem>>, vector<1x16x432xbf16>
    %1 = vector.shape_cast %0 : vector<1x16x432xbf16> to vector<16x432xbf16>
    %c0_2 = arith.constant 0 : index
    %c0_3 = arith.constant 0 : index
    %2 = vector.load %arg3[%c0_2, %c0_3] : memref<432x128xbf16, #tpu.memory_space<vmem>>, vector<432x128xbf16>
    %cst = arith.constant dense<0.000000e+00> : vector<16x128xf32>
    %3 = tpu.matmul %1, %2, %cst {dimension_numbers = #tpu.dot_dimension_numbers<[1], [0], [0], [1], [0, 0, 1, 1], [], []>} : vector<16x432xbf16>, vector<432x128xbf16>, vector<16x128xf32> -> vector<16x128xf32>
    %c0_4 = arith.constant 0 : index
    %c0_5 = arith.constant 0 : index
    %4 = vector.load %arg4[%c0_4, %c0_5] : memref<1x128xf32, #tpu.memory_space<vmem>>, vector<1x128xf32>
    %5 = vector.broadcast %4 : vector<1x128xf32> to vector<16x128xf32>
    %6 = arith.addf %3, %5 : vector<16x128xf32>
    %cst_6 = arith.constant 0.000000e+00 : f32
    %7 = vector.broadcast %cst_6 : f32 to vector<16x128xf32>
    %8 = arith.maximumf %6, %7 : vector<16x128xf32>
    %c0_7 = arith.constant 0 : index
    %c0_8 = arith.constant 0 : index
    %c0_9 = arith.constant 0 : index
    %9 = vector.load %arg5[%c0_7, %c0_8, %c0_9] : memref<1x16x128xf32, #tpu.memory_space<vmem>>, vector<1x16x128xf32>
    %10 = vector.shape_cast %9 : vector<1x16x128xf32> to vector<16x128xf32>
    %11 = vector.shape_cast %8 : vector<16x128xf32> to vector<1x16x128xf32>
    tpu.vector_store %arg5[%c0_7, %c0_8, %c0_9], %11 {strides = array<i32>} : memref<1x16x128xf32, #tpu.memory_space<vmem>>, vector<1x16x128xf32>,
    return
  }
  func.func @transform_0(%arg0: i32, %arg1: i32) -> (i32, i32, i32) {
    %c0_i32 = arith.constant 0 : i32
    %c0_i32_0 = arith.constant 0 : i32
    return %arg0, %arg1, %c0_i32 : i32, i32, i32
  }
  func.func @transform_1(%arg0: i32, %arg1: i32) -> (i32, i32) {
    %c0_i32 = arith.constant 0 : i32
    %c0_i32_0 = arith.constant 0 : i32
    %c0_i32_1 = arith.constant 0 : i32
    return %c0_i32, %c0_i32_0 : i32, i32
  }
  func.func @transform_2(%arg0: i32, %arg1: i32) -> (i32, i32) {
    %c0_i32 = arith.constant 0 : i32
    %c0_i32_0 = arith.constant 0 : i32
    %c0_i32_1 = arith.constant 0 : i32
    return %c0_i32, %c0_i32_0 : i32, i32
  }
  func.func @transform_3(%arg0: i32, %arg1: i32) -> (i32, i32, i32) {
    %c0_i32 = arith.constant 0 : i32
    %c0_i32_0 = arith.constant 0 : i32
    return %arg0, %arg1, %c0_i32 : i32, i32, i32
  }
}

</mosaic_0001>

<bundles_post_ra>
// kernel: extractor_forward.8
= control target key start
LH: loop header
LB: loop body
LE: loop exit
PB: predicated region body
PF: predicated region fallthrough
CT: control target
= control target key end

     0   :  { %s1652_s12 = smov 0   ;;  %s1654_s13 = smov 0   ;;  %s1928_s0 = inlined_call_operand.vmem [shape: bf16[2,240,363], index: 0, kind: input, shape index: {}]   ;;  %s1929_s1 = inlined_call_operand.vmem [shape: bf16[363,128], index: 1, kind: input, shape index: {}]   ;;  %s1930_s2 = inlined_call_operand.vmem [shape: f32[1,128], index: 2, kind: input, shape index: {}]   ;;  %s1931_s3 = inlined_call_operand.vmem [shape: f32[2,240,128], index: 3, kind: output, shape index: {}]  }
   0x1   :  { %s1656_s14 = smov 0  }
   0x2 LB: > { %s25_s15 = sadd.s32 1, %s1623_s13  ;;  %p1202_p0 = scmp.ge.s32.totalorder %s1627_s14, 1  ;;  %s1627_s14 = sphi %s1656_s14, %s13_s14   ;;  %s1623_s13 = sphi %s1654_s13, %s1933_s13   ;;  %s1619_s12 = sphi %s1652_s12, %s1932_s12  }
   0x3   : > { %p27_p1 = scmp.ge.s32.totalorder %s25_s15, 2  ;;  %p159_p2 = scmp.lt.s32.totalorder %s1627_s14, 3 }
   0x5   : > { %s1935_s15 = smov (%p27_p1, %s25_s15), 0  ;;  %p160_p3 = pnand %p1202_p0, %p159_p2 }
   0x6   : > { %p193_p4 = scmp.lt.s32.totalorder (!%p160_p3), %s1619_s12, 1 }
   0x7   : > { %163 = sbr.rel (%p160_p3) target bundleno = 365 (0x16d), region = 32 }
   0xc   : > { %v1522_v0 = vld [vmem:[%s1929_s1 + $0x78] sm:$0xff]   ;;  %v1629_v2 = vmov 0.0   ;;  %vm735_vm0 = vcmask 1044480   ;;  %v1524_v3 = vld [vmem:[%s1929_s1 + $0x70] sm:$0xff]   ;;  %vm736_vm1 = vcmask 1045504   ;;  %v1630_v6 = vmov 65535  }
   0xd   : > { %v1523_v1 = vld [vmem:[%s1929_s1 + $0x38] sm:$0xff]   ;;  %1419 = vmatprep.subr.bf16.mxu1 %v1629_v2  ;;  %1291 = vmatprep.subr.bf16.mxu0 %v1522_v0  ;;  %v1525_v4 = vld [vmem:[%s1929_s1 + $0x30] sm:$0xff]   ;;  %v737_v7 = vsel %vm735_vm0, 4294967295, %v1630_v6  ;;  %v1527_v8 = vld [vmem:[%s1929_s1 + $0x68] sm:$0xff]   ;;  %vm1631_vm2 = vmmov 0   ;;  %s1937_s12 = smov (!%p193_p4, %s1619_s12), 1 }
   0xe   : > { %1292 = vmatpush3.bf16.msra.mxu0 %v1523_v1  ;;  %v1526_v5 = vld [vmem:[%s1929_s1 + $0xb0] sm:$0x3f]   ;;  %v738_v9 = vsel %vm736_vm1, %v737_v7, 0  ;;  %v1528_v11 = vld [vmem:[%s1929_s1 + $0x28] sm:$0xff]   ;;  %v1530_v12 = vld [vmem:[%s1929_s1 + $0x60] sm:$0xff]   ;;  %1433 = vmatprep.mubr.msk.bf16.mxu1 %vm1631_vm2, %v1629_v2  ;;  %s1493_s23 = smul.u32 360, %s1937_s12 }
   0xf   : > { %1293 = vmatprep.subr.bf16.mxu0 %v1524_v3  ;;  %v740_v10 = vand.u32 %v1526_v5, %v738_v9  ;;  %v1529_v13 = vld [vmem:[%s1929_s1 + $0xa8] sm:$0xff]   ;;  %v1531_v14 = vld [vmem:[%s1929_s1 + $0x20] sm:$0xff]   ;;  %v1533_v15 = vld [vmem:[%s1929_s1 + $0x58] sm:$0xff]   ;;  %vm689_vm3 = vcmask 875520   ;;  %s1494_s22 = smul.u32 240, %s1937_s12 }
  0x10   : > { %v1532_v16 = vld [vmem:[%s1929_s1 + $0xa0] sm:$0xff]   ;;  %v1534_v17 = vld [vmem:[%s1929_s1 + $0x18] sm:$0xff]   ;;  %v1536_v18 = vld [vmem:[%s1929_s1 + $0x50] sm:$0xff]   ;;  %s1740_s5 = scalar_lea.vmem %s1928_s0, %s1493_s23 }
  0x11   : > { %1420 = vmatpush3.bf16.msra.mxu1 %v740_v10  ;;  %v1535_v19 = vld [vmem:[%s1929_s1 + $0x98] sm:$0xff]   ;;  %v1537_v20 = vld [vmem:[%s1929_s1 + $0x10] sm:$0xff]   ;;  %v1539_v21 = vld [vmem:[%s1929_s1 + $0x48] sm:$0xff]   ;;  %s1858_s25 = scalar_lea.vmem %s1931_s3, %s1494_s22 }
  0x12   : > { %1294 = vmatpush3.bf16.msra.mxu0 %v1525_v4  ;;  %1421 = vmatprep.subr.bf16.mxu1 %v1629_v2  ;;  %v1538_v22 = vld [vmem:[%s1929_s1 + $0x90] sm:$0xff]   ;;  %v1540_v23 = vld [vmem:[%s1929_s1 + $0x8] sm:$0xff]   ;;  %v1542_v24 = vld [vmem:[%s1929_s1 + $0x40] sm:$0xff]  }
  0x13   : > { %1295 = vmatprep.subr.bf16.mxu0 %v1527_v8  ;;  %v1547_v25 = vld [vmem:[%s1740_s5 + $0x4] ss:$12 sps:$4 sm:$0xff]   ;;  %v1541_v26 = vld [vmem:[%s1929_s1 + $0x88] sm:$0xff]   ;;  %v1553_v33 = vld [vmem:[%s1740_s5 + $0x34] ss:$12 sps:$4 sm:$0xff]  }
  0x14   : > { %774 = vmatprep.mubr.bf16.mxu0 %v1547_v25  ;;  %v1543_v27 = vld [vmem:[%s1929_s1] sm:$0xff]   ;;  %v1549_v30 = vld [vmem:[%s1740_s5 + $0x1c] ss:$12 sps:$4 sm:$0xff]   ;;  %v1557_v36 = vld [vmem:[%s1740_s5 + $0x4c] ss:$12 sps:$4 sm:$0xff]  }
  0x15   : > { %1422 = vmatpush3.bf16.msra.mxu1 %v1529_v13  ;;  %v1544_v28 = vld [vmem:[%s1929_s1 + $0x80] sm:$0xff]   ;;  %v1548_v31 = vld [vmem:[%s1740_s5 + $0x8] ss:$12 sps:$4 sm:$0xff]   ;;  %v1555_v35 = vld [vmem:[%s1740_s5 + $0x30] ss:$12 sps:$4 sm:$0xff]  }
  0x16   : > { %1296 = vmatpush3.bf16.msra.mxu0 %v1528_v11  ;;  %1423 = vmatprep.subr.bf16.mxu1 %v1629_v2  ;;  %v1545_v29 = vld [vmem:[%s1740_s5] ss:$12 sps:$4 sm:$0xff]   ;;  %v1551_v32 = vld [vmem:[%s1740_s5 + $0x18] ss:$12 sps:$4 sm:$0xff]   ;;  %v1559_v38 = vld [vmem:[%s1740_s5 + $0x48] ss:$12 sps:$4 sm:$0xff]  }
  0x17   : > { %1297 = vmatprep.subr.bf16.mxu0 %v1530_v12  ;;  %v1552_v34 = vld [vmem:[%s1740_s5 + $0x20] ss:$12 sps:$4 sm:$0xff]   ;;  %v1556_v37 = vld [vmem:[%s1740_s5 + $0x38] ss:$12 sps:$4 sm:$0xff]   ;;  %v1560_v40 = vld [vmem:[%s1740_s5 + $0x50] ss:$12 sps:$4 sm:$0xff]  }
  0x18   : > { %v1561_v39 = vld [vmem:[%s1740_s5 + $0x64] ss:$12 sps:$4 sm:$0xff]   ;;  %v1563_v41 = vld [vmem:[%s1740_s5 + $0x60] ss:$12 sps:$4 sm:$0xff]   ;;  %v1565_v42 = vld [vmem:[%s1740_s5 + $0x7c] ss:$12 sps:$4 sm:$0xff]  }
  0x19   : > { %1424 = vmatpush3.bf16.msra.mxu1 %v1532_v16  ;;  %v1564_v43 = vld [vmem:[%s1740_s5 + $0x68] ss:$12 sps:$4 sm:$0xff]   ;;  %v1567_v44 = vld [vmem:[%s1740_s5 + $0x78] ss:$12 sps:$4 sm:$0xff]   ;;  %v1568_v46 = vld [vmem:[%s1740_s5 + $0x80] ss:$12 sps:$4 sm:$0xff]  }
  0x1a   : > { %1298 = vmatpush3.bf16.msra.mxu0 %v1531_v14  ;;  %1425 = vmatprep.subr.bf16.mxu1 %v1629_v2  ;;  %v1569_v45 = vld [vmem:[%s1740_s5 + $0x94] ss:$12 sps:$4 sm:$0xff]   ;;  %v1571_v47 = vld [vmem:[%s1740_s5 + $0x90] ss:$12 sps:$4 sm:$0xff]   ;;  %v1573_v48 = vld [vmem:[%s1740_s5 + $0xac] ss:$12 sps:$4 sm:$0xff]  }
  0x1b   : > { %1299 = vmatprep.subr.bf16.mxu0 %v1533_v15  ;;  %v1572_v49 = vld [vmem:[%s1740_s5 + $0x98] ss:$12 sps:$4 sm:$0xff]   ;;  %v1575_v50 = vld [vmem:[%s1740_s5 + $0xa8] ss:$12 sps:$4 sm:$0xff]   ;;  %v1576_v52 = vld [vmem:[%s1740_s5 + $0xb0] ss:$12 sps:$4 sm:$0xff]  }
  0x1c   : > { %v1577_v51 = vld [vmem:[%s1740_s5 + $0xc4] ss:$12 sps:$4 sm:$0xff]   ;;  %v1579_v53 = vld [vmem:[%s1740_s5 + $0xc0] ss:$12 sps:$4 sm:$0xff]   ;;  %v1581_v54 = vld [vmem:[%s1740_s5 + $0xdc] ss:$12 sps:$4 sm:$0xff]  }
  0x1d   : > { %1426 = vmatpush3.bf16.msra.mxu1 %v1535_v19  ;;  %v1580_v55 = vld [vmem:[%s1740_s5 + $0xc8] ss:$12 sps:$4 sm:$0xff]   ;;  %v1583_v56 = vld [vmem:[%s1740_s5 + $0xd8] ss:$12 sps:$4 sm:$0xff]   ;;  %v1584_v58 = vld [vmem:[%s1740_s5 + $0xe0] ss:$12 sps:$4 sm:$0xff]  }
  0x1e   : > { %1300 = vmatpush3.bf16.msra.mxu0 %v1534_v17  ;;  %1427 = vmatprep.subr.bf16.mxu1 %v1629_v2  ;;  %v1585_v57 = vld [vmem:[%s1740_s5 + $0xf4] ss:$12 sps:$4 sm:$0xff]   ;;  %v1587_v59 = vld [vmem:[%s1740_s5 + $0xf0] ss:$12 sps:$4 sm:$0xff]   ;;  %v1589_v60 = vld [vmem:[%s1740_s5 + $0x10c] ss:$12 sps:$4 sm:$0xff]  }
  0x1f   : > { %1301 = vmatprep.subr.bf16.mxu0 %v1536_v18  ;;  %v1588_v61 = vld [vmem:[%s1740_s5 + $0xf8] ss:$12 sps:$4 sm:$0xff]   ;;  %v1591_v62 = vld [vmem:[%s1740_s5 + $0x108] ss:$12 sps:$4 sm:$0xff]   ;;  %v1592_v0 = vld [vmem:[%s1740_s5 + $0x110] ss:$12 sps:$4 sm:$0xff]  }
  0x20   : > { %v1593_v63 = vld [vmem:[%s1740_s5 + $0x124] ss:$12 sps:$4 sm:$0xff]   ;;  %v1595_v1 = vld [vmem:[%s1740_s5 + $0x120] ss:$12 sps:$4 sm:$0xff]   ;;  %v1597_v3 = vld [vmem:[%s1740_s5 + $0x13c] ss:$12 sps:$4 sm:$0xff]  }
  0x21   : > { %1428 = vmatpush3.bf16.msra.mxu1 %v1538_v22  ;;  %v1596_v4 = vld [vmem:[%s1740_s5 + $0x128] ss:$12 sps:$4 sm:$0xff]   ;;  %v1599_v5 = vld [vmem:[%s1740_s5 + $0x138] ss:$12 sps:$4 sm:$0xff]   ;;  %v1600_v7 = vld [vmem:[%s1740_s5 + $0x140] ss:$12 sps:$4 sm:$0xff]  }
  0x22   : > { %1302 = vmatpush3.bf16.msra.mxu0 %v1537_v20  ;;  %1429 = vmatprep.subr.bf16.mxu1 %v1629_v2  ;;  %v1601_v6 = vld [vmem:[%s1740_s5 + $0x154] ss:$12 sps:$4 sm:$0xff]   ;;  %v1603_v8 = vld [vmem:[%s1740_s5 + $0x150] ss:$12 sps:$4 sm:$0xff]   ;;  %v1604_v9 = vld [vmem:[%s1740_s5 + $0x158] ss:$12 sps:$4 sm:$0xff]  }
  0x23   : > { %1303 = vmatprep.subr.bf16.mxu0 %v1539_v21  ;;  %v1851_v12 = vld [vmem:[%s1930_s2] ss:$0 sm:$0xff] }
  0x25   : > { %1430 = vmatpush3.bf16.msra.mxu1 %v1541_v26 }
  0x26   : > { %1304 = vmatpush3.bf16.msra.mxu0 %v1540_v23  ;;  %1431 = vmatprep.subr.bf16.mxu1 %v1629_v2 }
  0x27   : > { %1305 = vmatprep.subr.bf16.mxu0 %v1542_v24 }
  0x29   : > { %1432 = vmatpush3.bf16.msra.mxu1 %v1544_v28 }
  0x2a   : > { %1306 = vmatpush3.bf16.msra.mxu0 %v1543_v27 }
  0x2c   : > { %1434 = vmatmul.mubr.msk.bf16.vlgmr.msra.gmra.mxu1 %vm689_vm3, %v1548_v31 }
  0x2d   : > { %775 = vmatmul.mubr.bf16.vlgmr.msra.gmra.mxu0 %v1545_v29  ;;  %1437 = vmatprep.mubr.msk.bf16.mxu1 %vm1631_vm2, %v1629_v2 }
  0x2e   : > { %782 = vmatprep.mubr.bf16.mxu0 %v1549_v30 }
  0x34   : > { %1438 = vmatmul.mubr.msk.bf16.gmra.mxu1 %vm689_vm3, %v1552_v34 }
  0x35   : > { %783 = vmatmul.mubr.bf16.gmra.mxu0 %v1551_v32  ;;  %1441 = vmatprep.mubr.msk.bf16.mxu1 %vm1631_vm2, %v1629_v2 }
  0x36   : > { %790 = vmatprep.mubr.bf16.mxu0 %v1553_v33 }
  0x3c   : > { %1442 = vmatmul.mubr.msk.bf16.gmra.mxu1 %vm689_vm3, %v1556_v37 }
  0x3d   : > { %791 = vmatmul.mubr.bf16.gmra.mxu0 %v1555_v35  ;;  %1445 = vmatprep.mubr.msk.bf16.mxu1 %vm1631_vm2, %v1629_v2 }
  0x3e   : > { %798 = vmatprep.mubr.bf16.mxu0 %v1557_v36 }
  0x44   : > { %1446 = vmatmul.mubr.msk.bf16.gmra.mxu1 %vm689_vm3, %v1560_v40 }
  0x45   : > { %799 = vmatmul.mubr.bf16.gmra.mxu0 %v1559_v38  ;;  %1449 = vmatprep.mubr.msk.bf16.mxu1 %vm1631_vm2, %v1629_v2 }
  0x46   : > { %806 = vmatprep.mubr.bf16.mxu0 %v1561_v39 }
  0x4c   : > { %1450 = vmatmul.mubr.msk.bf16.gmra.mxu1 %vm689_vm3, %v1564_v43 }
  0x4d   : > { %807 = vmatmul.mubr.bf16.gmra.mxu0 %v1563_v41  ;;  %1453 = vmatprep.mubr.msk.bf16.mxu1 %vm1631_vm2, %v1629_v2 }
  0x4e   : > { %814 = vmatprep.mubr.bf16.mxu0 %v1565_v42 }
  0x54   : > { %1454 = vmatmul.mubr.msk.bf16.gmra.mxu1 %vm689_vm3, %v1568_v46 }
  0x55   : > { %815 = vmatmul.mubr.bf16.gmra.mxu0 %v1567_v44  ;;  %1457 = vmatprep.mubr.msk.bf16.mxu1 %vm1631_vm2, %v1629_v2 }
  0x56   : > { %822 = vmatprep.mubr.bf16.mxu0 %v1569_v45 }
  0x5c   : > { %1458 = vmatmul.mubr.msk.bf16.gmra.mxu1 %vm689_vm3, %v1572_v49 }
  0x5d   : > { %823 = vmatmul.mubr.bf16.gmra.mxu0 %v1571_v47  ;;  %1461 = vmatprep.mubr.msk.bf16.mxu1 %vm1631_vm2, %v1629_v2 }
  0x5e   : > { %830 = vmatprep.mubr.bf16.mxu0 %v1573_v48 }
  0x64   : > { %1462 = vmatmul.mubr.msk.bf16.gmra.mxu1 %vm689_vm3, %v1576_v52 }
  0x65   : > { %831 = vmatmul.mubr.bf16.gmra.mxu0 %v1575_v50  ;;  %1465 = vmatprep.mubr.msk.bf16.mxu1 %vm1631_vm2, %v1629_v2 }
  0x66   : > { %838 = vmatprep.mubr.bf16.mxu0 %v1577_v51 }
  0x6c   : > { %1466 = vmatmul.mubr.msk.bf16.gmra.mxu1 %vm689_vm3, %v1580_v55 }
  0x6d   : > { %839 = vmatmul.mubr.bf16.gmra.mxu0 %v1579_v53  ;;  %1469 = vmatprep.mubr.msk.bf16.mxu1 %vm1631_vm2, %v1629_v2 }
  0x6e   : > { %846 = vmatprep.mubr.bf16.mxu0 %v1581_v54 }
  0x74   : > { %1470 = vmatmul.mubr.msk.bf16.gmra.mxu1 %vm689_vm3, %v1584_v58 }
  0x75   : > { %847 = vmatmul.mubr.bf16.gmra.mxu0 %v1583_v56  ;;  %1473 = vmatprep.mubr.msk.bf16.mxu1 %vm1631_vm2, %v1629_v2 }
  0x76   : > { %854 = vmatprep.mubr.bf16.mxu0 %v1585_v57 }
  0x7c   : > { %1474 = vmatmul.mubr.msk.bf16.gmra.mxu1 %vm689_vm3, %v1588_v61 }
  0x7d   : > { %855 = vmatmul.mubr.bf16.gmra.mxu0 %v1587_v59  ;;  %1477 = vmatprep.mubr.msk.bf16.mxu1 %vm1631_vm2, %v1629_v2 }
  0x7e   : > { %862 = vmatprep.mubr.bf16.mxu0 %v1589_v60 }
  0x84   : > { %1478 = vmatmul.mubr.msk.bf16.gmra.mxu1 %vm689_vm3, %v1592_v0 }
  0x85   : > { %863 = vmatmul.mubr.bf16.gmra.mxu0 %v1591_v62  ;;  %1481 = vmatprep.mubr.msk.bf16.mxu1 %vm1631_vm2, %v1629_v2 }
  0x86   : > { %870 = vmatprep.mubr.bf16.mxu0 %v1593_v63 }
  0x8c   : > { %1482 = vmatmul.mubr.msk.bf16.gmra.mxu1 %vm689_vm3, %v1596_v4 }
  0x8d   : > { %871 = vmatmul.mubr.bf16.gmra.mxu0 %v1595_v1  ;;  %1485 = vmatprep.mubr.msk.bf16.mxu1 %vm1631_vm2, %v1629_v2 }
  0x8e   : > { %878 = vmatprep.mubr.bf16.mxu0 %v1597_v3 }
  0x94   : > { %1486 = vmatmul.mubr.msk.bf16.gmra.mxu1 %vm689_vm3, %v1600_v7 }
  0x95   : > { %879 = vmatmul.mubr.bf16.gmra.mxu0 %v1599_v5  ;;  %1489 = vmatprep.mubr.msk.bf16.mxu1 %vm1631_vm2, %v1629_v2 }
  0x96   : > { %886 = vmatprep.mubr.bf16.mxu0 %v1601_v6 }
  0x9c   : > { %1490 = vmatmul.mubr.msk.bf16.gmra.mxu1 %vm689_vm3, %v1604_v9 }
  0x9d   : > { %887 = vmatmul.mubr.bf16.gmra.mxu0 %v1603_v8 }
  0xec   : > { %v929_v11 = vpop.f32.mrf.mxu1 }
  0xed   : > { %v1307_v10 = vpop.f32.mrf.mxu0 }
  0xee   : > { %v1435_v15 = vpop.f32.mrf.mxu1 }
  0xef   : > { %v1308_v13 = vpop.f32.mrf.mxu0 }
  0xf0   : > { %v1309_v14 = vadd.f32 %v1308_v13, %v1307_v10  ;;  %v932_v2 = vpop.f32.mrf.mxu1 }
  0xf1   : > { %v1310_v16 = vpop.f32.mrf.mxu0 }
  0xf2   : > { %v777_v17 = vadd.f32 %v1309_v14, %v1851_v12  ;;  %v1436_v21 = vpop.f32.mrf.mxu1 }
  0xf3   : > { %v1311_v18 = vpop.f32.mrf.mxu0 }
  0xf4   : > { %v930_v19 = vadd.f32 %v929_v11, %v777_v17  ;;  %v1312_v20 = vadd.f32 %v1311_v18, %v1310_v16  ;;  %v937_v25 = vpop.f32.mrf.mxu1 }
  0xf5   : > { %v1313_v22 = vpop.f32.mrf.mxu0 }
  0xf6   : > { %v1048_v23 = vmax.f32 %v930_v19, 0.0  ;;  %v780_v24 = vadd.f32 %v1312_v20, %v1851_v12  ;;  %v1439_v29 = vpop.f32.mrf.mxu1 }
  0xf7   : > { %v1314_v26 = vpop.f32.mrf.mxu0 }
  0xf8   : > { %1078 = vst [vmem:[%s1858_s25] sm:$0xff] %v1048_v23  ;;  %v933_v27 = vadd.f32 %v932_v2, %v780_v24  ;;  %v1315_v28 = vadd.f32 %v1314_v26, %v1313_v22  ;;  %v940_v33 = vpop.f32.mrf.mxu1 }
  0xf9   : > { %v1316_v30 = vpop.f32.mrf.mxu0 }
  0xfa   : > { %v1049_v31 = vmax.f32 %v933_v27, 0.0  ;;  %v785_v32 = vadd.f32 %v1315_v28, %v1851_v12  ;;  %v1440_v37 = vpop.f32.mrf.mxu1 }
  0xfb   : > { %v1317_v34 = vpop.f32.mrf.mxu0 }
  0xfc   : > { %1079 = vst [vmem:[%s1858_s25 + $0x8] sm:$0xff] %v1049_v31  ;;  %v938_v35 = vadd.f32 %v937_v25, %v785_v32  ;;  %v1318_v36 = vadd.f32 %v1317_v34, %v1316_v30  ;;  %v945_v41 = vpop.f32.mrf.mxu1 }
  0xfd   : > { %v1319_v38 = vpop.f32.mrf.mxu0 }
  0xfe   : > { %v1050_v39 = vmax.f32 %v938_v35, 0.0  ;;  %v788_v40 = vadd.f32 %v1318_v36, %v1851_v12  ;;  %v1443_v45 = vpop.f32.mrf.mxu1 }
  0xff   : > { %v1320_v42 = vpop.f32.mrf.mxu0 }
 0x100   : > { %1080 = vst [vmem:[%s1858_s25 + $0x10] sm:$0xff] %v1050_v39  ;;  %v941_v43 = vadd.f32 %v940_v33, %v788_v40  ;;  %v1321_v44 = vadd.f32 %v1320_v42, %v1319_v38  ;;  %v948_v49 = vpop.f32.mrf.mxu1 }
 0x101   : > { %v1322_v46 = vpop.f32.mrf.mxu0 }
 0x102   : > { %v1051_v47 = vmax.f32 %v941_v43, 0.0  ;;  %v793_v48 = vadd.f32 %v1321_v44, %v1851_v12  ;;  %v1444_v53 = vpop.f32.mrf.mxu1 }
 0x103   : > { %v1323_v50 = vpop.f32.mrf.mxu0 }
 0x104   : > { %1081 = vst [vmem:[%s1858_s25 + $0x18] sm:$0xff] %v1051_v47  ;;  %v946_v51 = vadd.f32 %v945_v41, %v793_v48  ;;  %v1324_v52 = vadd.f32 %v1323_v50, %v1322_v46  ;;  %v953_v57 = vpop.f32.mrf.mxu1 }
 0x105   : > { %v1325_v54 = vpop.f32.mrf.mxu0 }
 0x106   : > { %v1052_v55 = vmax.f32 %v946_v51, 0.0  ;;  %v796_v56 = vadd.f32 %v1324_v52, %v1851_v12  ;;  %v1447_v61 = vpop.f32.mrf.mxu1 }
 0x107   : > { %v1326_v58 = vpop.f32.mrf.mxu0 }
 0x108   : > { %1082 = vst [vmem:[%s1858_s25 + $0x20] sm:$0xff] %v1052_v55  ;;  %v949_v59 = vadd.f32 %v948_v49, %v796_v56  ;;  %v1327_v60 = vadd.f32 %v1326_v58, %v1325_v54  ;;  %v956_v1 = vpop.f32.mrf.mxu1 }
 0x109   : > { %v1328_v62 = vpop.f32.mrf.mxu0 }
 0x10a   : > { %v1053_v63 = vmax.f32 %v949_v59, 0.0  ;;  %v801_v0 = vadd.f32 %v1327_v60, %v1851_v12  ;;  %v1448_v6 = vpop.f32.mrf.mxu1 }
 0x10b   : > { %v1329_v3 = vpop.f32.mrf.mxu0 }
 0x10c   : > { %1083 = vst [vmem:[%s1858_s25 + $0x28] sm:$0xff] %v1053_v63  ;;  %v954_v4 = vadd.f32 %v953_v57, %v801_v0  ;;  %v1330_v5 = vadd.f32 %v1329_v3, %v1328_v62  ;;  %v961_v10 = vpop.f32.mrf.mxu1 }
 0x10d   : > { %v1331_v7 = vpop.f32.mrf.mxu0 }
 0x10e   : > { %v1054_v8 = vmax.f32 %v954_v4, 0.0  ;;  %v804_v9 = vadd.f32 %v1330_v5, %v1851_v12  ;;  %v1451_v15 = vpop.f32.mrf.mxu1 }
 0x10f   : > { %v1332_v11 = vpop.f32.mrf.mxu0 }
 0x110   : > { %1084 = vst [vmem:[%s1858_s25 + $0x30] sm:$0xff] %v1054_v8  ;;  %v957_v13 = vadd.f32 %v956_v1, %v804_v9  ;;  %v1333_v14 = vadd.f32 %v1332_v11, %v1331_v7  ;;  %v964_v18 = vpop.f32.mrf.mxu1 }
 0x111   : > { %v1334_v16 = vpop.f32.mrf.mxu0 }
 0x112   : > { %v1055_v17 = vmax.f32 %v957_v13, 0.0  ;;  %v809_v2 = vadd.f32 %v1333_v14, %v1851_v12  ;;  %v1452_v22 = vpop.f32.mrf.mxu1 }
 0x113   : > { %v1335_v19 = vpop.f32.mrf.mxu0 }
 0x114   : > { %1085 = vst [vmem:[%s1858_s25 + $0x38] sm:$0xff] %v1055_v17  ;;  %v962_v20 = vadd.f32 %v961_v10, %v809_v2  ;;  %v1336_v21 = vadd.f32 %v1335_v19, %v1334_v16  ;;  %v969_v26 = vpop.f32.mrf.mxu1 }
 0x115   : > { %v1337_v23 = vpop.f32.mrf.mxu0 }
 0x116   : > { %v1056_v24 = vmax.f32 %v962_v20, 0.0  ;;  %v812_v25 = vadd.f32 %v1336_v21, %v1851_v12  ;;  %v1455_v30 = vpop.f32.mrf.mxu1 }
 0x117   : > { %v1338_v27 = vpop.f32.mrf.mxu0 }
 0x118   : > { %1086 = vst [vmem:[%s1858_s25 + $0x40] sm:$0xff] %v1056_v24  ;;  %v965_v28 = vadd.f32 %v964_v18, %v812_v25  ;;  %v1339_v29 = vadd.f32 %v1338_v27, %v1337_v23  ;;  %v972_v34 = vpop.f32.mrf.mxu1 }
 0x119   : > { %v1340_v31 = vpop.f32.mrf.mxu0 }
 0x11a   : > { %v1057_v32 = vmax.f32 %v965_v28, 0.0  ;;  %v817_v33 = vadd.f32 %v1339_v29, %v1851_v12  ;;  %v1456_v38 = vpop.f32.mrf.mxu1 }
 0x11b   : > { %v1341_v35 = vpop.f32.mrf.mxu0 }
 0x11c   : > { %1087 = vst [vmem:[%s1858_s25 + $0x48] sm:$0xff] %v1057_v32  ;;  %v970_v36 = vadd.f32 %v969_v26, %v817_v33  ;;  %v1342_v37 = vadd.f32 %v1341_v35, %v1340_v31  ;;  %v977_v42 = vpop.f32.mrf.mxu1 }
 0x11d   : > { %v1343_v39 = vpop.f32.mrf.mxu0 }
 0x11e   : > { %v1058_v40 = vmax.f32 %v970_v36, 0.0  ;;  %v820_v41 = vadd.f32 %v1342_v37, %v1851_v12  ;;  %v1459_v46 = vpop.f32.mrf.mxu1 }
 0x11f   : > { %v1344_v43 = vpop.f32.mrf.mxu0 }
 0x120   : > { %1088 = vst [vmem:[%s1858_s25 + $0x50] sm:$0xff] %v1058_v40  ;;  %v973_v44 = vadd.f32 %v972_v34, %v820_v41  ;;  %v1345_v45 = vadd.f32 %v1344_v43, %v1343_v39  ;;  %v980_v50 = vpop.f32.mrf.mxu1 }
 0x121   : > { %v1346_v47 = vpop.f32.mrf.mxu0 }
 0x122   : > { %v1059_v48 = vmax.f32 %v973_v44, 0.0  ;;  %v825_v49 = vadd.f32 %v1345_v45, %v1851_v12  ;;  %v1460_v54 = vpop.f32.mrf.mxu1 }
 0x123   : > { %v1347_v51 = vpop.f32.mrf.mxu0 }
 0x124   : > { %1089 = vst [vmem:[%s1858_s25 + $0x58] sm:$0xff] %v1059_v48  ;;  %v978_v52 = vadd.f32 %v977_v42, %v825_v49  ;;  %v1348_v53 = vadd.f32 %v1347_v51, %v1346_v47  ;;  %v985_v58 = vpop.f32.mrf.mxu1 }
 0x125   : > { %v1349_v55 = vpop.f32.mrf.mxu0 }
 0x126   : > { %v1060_v56 = vmax.f32 %v978_v52, 0.0  ;;  %v828_v57 = vadd.f32 %v1348_v53, %v1851_v12  ;;  %v1463_v62 = vpop.f32.mrf.mxu1 }
 0x127   : > { %v1350_v59 = vpop.f32.mrf.mxu0 }
 0x128   : > { %1090 = vst [vmem:[%s1858_s25 + $0x60] sm:$0xff] %v1060_v56  ;;  %v981_v60 = vadd.f32 %v980_v50, %v828_v57  ;;  %v1351_v61 = vadd.f32 %v1350_v59, %v1349_v55  ;;  %v988_v3 = vpop.f32.mrf.mxu1 }
 0x129   : > { %v1352_v63 = vpop.f32.mrf.mxu0 }
 0x12a   : > { %v1061_v0 = vmax.f32 %v981_v60, 0.0  ;;  %v833_v1 = vadd.f32 %v1351_v61, %v1851_v12  ;;  %v1464_v7 = vpop.f32.mrf.mxu1 }
 0x12b   : > { %v1353_v4 = vpop.f32.mrf.mxu0 }
 0x12c   : > { %1091 = vst [vmem:[%s1858_s25 + $0x68] sm:$0xff] %v1061_v0  ;;  %v986_v5 = vadd.f32 %v985_v58, %v833_v1  ;;  %v1354_v6 = vadd.f32 %v1353_v4, %v1352_v63  ;;  %v993_v11 = vpop.f32.mrf.mxu1 }
 0x12d   : > { %v1355_v8 = vpop.f32.mrf.mxu0 }
 0x12e   : > { %v1062_v9 = vmax.f32 %v986_v5, 0.0  ;;  %v836_v10 = vadd.f32 %v1354_v6, %v1851_v12  ;;  %v1467_v16 = vpop.f32.mrf.mxu1 }
 0x12f   : > { %v1356_v13 = vpop.f32.mrf.mxu0 }
 0x130   : > { %1092 = vst [vmem:[%s1858_s25 + $0x70] sm:$0xff] %v1062_v9  ;;  %v989_v14 = vadd.f32 %v988_v3, %v836_v10  ;;  %v1357_v15 = vadd.f32 %v1356_v13, %v1355_v8  ;;  %v996_v19 = vpop.f32.mrf.mxu1 }
 0x131   : > { %v1358_v17 = vpop.f32.mrf.mxu0 }
 0x132   : > { %v1063_v2 = vmax.f32 %v989_v14, 0.0  ;;  %v841_v18 = vadd.f32 %v1357_v15, %v1851_v12  ;;  %v1468_v23 = vpop.f32.mrf.mxu1 }
 0x133   : > { %v1359_v20 = vpop.f32.mrf.mxu0 }
 0x134   : > { %1093 = vst [vmem:[%s1858_s25 + $0x78] sm:$0xff] %v1063_v2  ;;  %v994_v21 = vadd.f32 %v993_v11, %v841_v18  ;;  %v1360_v22 = vadd.f32 %v1359_v20, %v1358_v17  ;;  %v1001_v27 = vpop.f32.mrf.mxu1 }
 0x135   : > { %v1361_v24 = vpop.f32.mrf.mxu0 }
 0x136   : > { %v1064_v25 = vmax.f32 %v994_v21, 0.0  ;;  %v844_v26 = vadd.f32 %v1360_v22, %v1851_v12  ;;  %v1471_v31 = vpop.f32.mrf.mxu1 }
 0x137   : > { %v1362_v28 = vpop.f32.mrf.mxu0 }
 0x138   : > { %1094 = vst [vmem:[%s1858_s25 + $0x80] sm:$0xff] %v1064_v25  ;;  %v997_v29 = vadd.f32 %v996_v19, %v844_v26  ;;  %v1363_v30 = vadd.f32 %v1362_v28, %v1361_v24  ;;  %v1004_v35 = vpop.f32.mrf.mxu1 }
 0x139   : > { %v1364_v32 = vpop.f32.mrf.mxu0 }
 0x13a   : > { %v1065_v33 = vmax.f32 %v997_v29, 0.0  ;;  %v849_v34 = vadd.f32 %v1363_v30, %v1851_v12  ;;  %v1472_v39 = vpop.f32.mrf.mxu1 }
 0x13b   : > { %v1365_v36 = vpop.f32.mrf.mxu0 }
 0x13c   : > { %1095 = vst [vmem:[%s1858_s25 + $0x88] sm:$0xff] %v1065_v33  ;;  %v1002_v37 = vadd.f32 %v1001_v27, %v849_v34  ;;  %v1366_v38 = vadd.f32 %v1365_v36, %v1364_v32  ;;  %v1009_v43 = vpop.f32.mrf.mxu1 }
 0x13d   : > { %v1367_v40 = vpop.f32.mrf.mxu0 }
 0x13e   : > { %v1066_v41 = vmax.f32 %v1002_v37, 0.0  ;;  %v852_v42 = vadd.f32 %v1366_v38, %v1851_v12  ;;  %v1475_v47 = vpop.f32.mrf.mxu1 }
 0x13f   : > { %v1368_v44 = vpop.f32.mrf.mxu0 }
 0x140   : > { %1096 = vst [vmem:[%s1858_s25 + $0x90] sm:$0xff] %v1066_v41  ;;  %v1005_v45 = vadd.f32 %v1004_v35, %v852_v42  ;;  %v1369_v46 = vadd.f32 %v1368_v44, %v1367_v40  ;;  %v1012_v51 = vpop.f32.mrf.mxu1 }
 0x141   : > { %v1370_v48 = vpop.f32.mrf.mxu0 }
 0x142   : > { %v1067_v49 = vmax.f32 %v1005_v45, 0.0  ;;  %v857_v50 = vadd.f32 %v1369_v46, %v1851_v12  ;;  %v1476_v55 = vpop.f32.mrf.mxu1 }
 0x143   : > { %v1371_v52 = vpop.f32.mrf.mxu0 }
 0x144   : > { %1097 = vst [vmem:[%s1858_s25 + $0x98] sm:$0xff] %v1067_v49  ;;  %v1010_v53 = vadd.f32 %v1009_v43, %v857_v50  ;;  %v1372_v54 = vadd.f32 %v1371_v52, %v1370_v48  ;;  %v1017_v59 = vpop.f32.mrf.mxu1 }
 0x145   : > { %v1373_v56 = vpop.f32.mrf.mxu0 }
 0x146   : > { %v1068_v57 = vmax.f32 %v1010_v53, 0.0  ;;  %v860_v58 = vadd.f32 %v1372_v54, %v1851_v12  ;;  %v1479_v63 = vpop.f32.mrf.mxu1 }
 0x147   : > { %v1374_v60 = vpop.f32.mrf.mxu0 }
 0x148   : > { %1098 = vst [vmem:[%s1858_s25 + $0xa0] sm:$0xff] %v1068_v57  ;;  %v1013_v61 = vadd.f32 %v1012_v51, %v860_v58  ;;  %v1375_v62 = vadd.f32 %v1374_v60, %v1373_v56  ;;  %v1020_v4 = vpop.f32.mrf.mxu1 }
 0x149   : > { %v1376_v0 = vpop.f32.mrf.mxu0 }
 0x14a   : > { %v1069_v1 = vmax.f32 %v1013_v61, 0.0  ;;  %v865_v3 = vadd.f32 %v1375_v62, %v1851_v12  ;;  %v1480_v8 = vpop.f32.mrf.mxu1 }
 0x14b   : > { %v1377_v5 = vpop.f32.mrf.mxu0 }
 0x14c   : > { %1099 = vst [vmem:[%s1858_s25 + $0xa8] sm:$0xff] %v1069_v1  ;;  %v1018_v6 = vadd.f32 %v1017_v59, %v865_v3  ;;  %v1378_v7 = vadd.f32 %v1377_v5, %v1376_v0  ;;  %v1025_v13 = vpop.f32.mrf.mxu1 }
 0x14d   : > { %v1379_v9 = vpop.f32.mrf.mxu0 }
 0x14e   : > { %v1070_v10 = vmax.f32 %v1018_v6, 0.0  ;;  %v868_v11 = vadd.f32 %v1378_v7, %v1851_v12  ;;  %v1483_v17 = vpop.f32.mrf.mxu1 }
 0x14f   : > { %v1380_v14 = vpop.f32.mrf.mxu0 }
 0x150   : > { %1100 = vst [vmem:[%s1858_s25 + $0xb0] sm:$0xff] %v1070_v10  ;;  %v1021_v15 = vadd.f32 %v1020_v4, %v868_v11  ;;  %v1381_v16 = vadd.f32 %v1380_v14, %v1379_v9  ;;  %v1028_v20 = vpop.f32.mrf.mxu1 }
 0x151   : > { %v1382_v2 = vpop.f32.mrf.mxu0 }
 0x152   : > { %v1071_v18 = vmax.f32 %v1021_v15, 0.0  ;;  %v873_v19 = vadd.f32 %v1381_v16, %v1851_v12  ;;  %v1484_v24 = vpop.f32.mrf.mxu1 }
 0x153   : > { %v1383_v21 = vpop.f32.mrf.mxu0 }
 0x154   : > { %1101 = vst [vmem:[%s1858_s25 + $0xb8] sm:$0xff] %v1071_v18  ;;  %v1026_v22 = vadd.f32 %v1025_v13, %v873_v19  ;;  %v1384_v23 = vadd.f32 %v1383_v21, %v1382_v2  ;;  %v1033_v28 = vpop.f32.mrf.mxu1 }
 0x155   : > { %v1385_v25 = vpop.f32.mrf.mxu0 }
 0x156   : > { %v1072_v26 = vmax.f32 %v1026_v22, 0.0  ;;  %v876_v27 = vadd.f32 %v1384_v23, %v1851_v12  ;;  %v1487_v32 = vpop.f32.mrf.mxu1 }
 0x157   : > { %v1386_v29 = vpop.f32.mrf.mxu0 }
 0x158   : > { %1102 = vst [vmem:[%s1858_s25 + $0xc0] sm:$0xff] %v1072_v26  ;;  %v1029_v30 = vadd.f32 %v1028_v20, %v876_v27  ;;  %v1387_v31 = vadd.f32 %v1386_v29, %v1385_v25  ;;  %v1036_v36 = vpop.f32.mrf.mxu1 }
 0x159   : > { %v1388_v33 = vpop.f32.mrf.mxu0 }
 0x15a   : > { %v1073_v34 = vmax.f32 %v1029_v30, 0.0  ;;  %v881_v35 = vadd.f32 %v1387_v31, %v1851_v12  ;;  %v1488_v40 = vpop.f32.mrf.mxu1 }
 0x15b   : > { %v1389_v37 = vpop.f32.mrf.mxu0 }
 0x15c   : > { %1103 = vst [vmem:[%s1858_s25 + $0xc8] sm:$0xff] %v1073_v34  ;;  %v1034_v38 = vadd.f32 %v1033_v28, %v881_v35  ;;  %v1390_v39 = vadd.f32 %v1389_v37, %v1388_v33  ;;  %v1041_v44 = vpop.f32.mrf.mxu1 }
 0x15d   : > { %v1391_v41 = vpop.f32.mrf.mxu0 }
 0x15e   : > { %v1074_v42 = vmax.f32 %v1034_v38, 0.0  ;;  %v884_v43 = vadd.f32 %v1390_v39, %v1851_v12  ;;  %v1491_v48 = vpop.f32.mrf.mxu1 }
 0x15f   : > { %v1392_v45 = vpop.f32.mrf.mxu0 }
 0x160   : > { %1104 = vst [vmem:[%s1858_s25 + $0xd0] sm:$0xff] %v1074_v42  ;;  %v1037_v46 = vadd.f32 %v1036_v36, %v884_v43  ;;  %v1393_v47 = vadd.f32 %v1392_v45, %v1391_v41  ;;  %v1044_v52 = vpop.f32.mrf.mxu1 }
 0x161   : > { %v1394_v49 = vpop.f32.mrf.mxu0 }
 0x162   : > { %v1075_v50 = vmax.f32 %v1037_v46, 0.0  ;;  %v889_v51 = vadd.f32 %v1393_v47, %v1851_v12  ;;  %v1492_v56 = vpop.f32.mrf.mxu1 }
 0x163   : > { %v1395_v53 = vpop.f32.mrf.mxu0 }
 0x164   : > { %1105 = vst [vmem:[%s1858_s25 + $0xd8] sm:$0xff] %v1075_v50  ;;  %v1042_v54 = vadd.f32 %v1041_v44, %v889_v51  ;;  %v1396_v55 = vadd.f32 %v1395_v53, %v1394_v49 }
 0x166   : > { %v1076_v57 = vmax.f32 %v1042_v54, 0.0  ;;  %v892_v58 = vadd.f32 %v1396_v55, %v1851_v12 }
 0x168   : > { %1106 = vst [vmem:[%s1858_s25 + $0xe0] sm:$0xff] %v1076_v57  ;;  %v1045_v59 = vadd.f32 %v1044_v52, %v892_v58 }
 0x16a   : > { %v1077_v60 = vmax.f32 %v1045_v59, 0.0 }
 0x16c   : > { %1107 = vst [vmem:[%s1858_s25 + $0xe8] sm:$0xff] %v1077_v60 }
 0x16d PF: > { %s13_s14 = sadd.s32 1, %s1627_s14   ;;  %s1932_s12 = smov %s1623_s13 }
 0x16e   : > { %p10_p5 = scmp.ge.s32.totalorder %s13_s14, 4   ;;  %s1933_s13 = smov %s1935_s15 }
 0x170   :  { %12 = sbr.rel (!%p10_p5) target bundleno = 2 (0x2), region = 62 }

// kernel: extractor_forward.9
= control target key start
LH: loop header
LB: loop body
LE: loop exit
PB: predicated region body
PF: predicated region fallthrough
CT: control target
= control target key end

     0   :  { %s325_s6 = smov 0   ;;  %s327_s7 = smov 0   ;;  %s358_s0 = inlined_call_operand.vmem [shape: f32[2,9,8,128], index: 0, kind: input, shape index: {}]   ;;  %s359_s1 = inlined_call_operand.vmem [shape: f32[2,8,128], index: 1, kind: output, shape index: {}]  }
   0x1   :  { %s329_s8 = smov 0  }
   0x2 LB: > { %s23_s9 = sadd.s32 1, %s309_s7  ;;  %p253_p0 = scmp.ge.s32.totalorder %s313_s8, 1  ;;  %s313_s8 = sphi %s329_s8, %s11_s8   ;;  %s309_s7 = sphi %s327_s7, %s361_s7   ;;  %s305_s6 = sphi %s325_s6, %s360_s6  }
   0x3   : > { %p25_p1 = scmp.ge.s32.totalorder %s23_s9, 2  ;;  %p106_p2 = scmp.lt.s32.totalorder %s313_s8, 3 }
   0x5   : > { %s363_s9 = smov (%p25_p1, %s23_s9), 0  ;;  %p107_p3 = pnand %p253_p0, %p106_p2 }
   0x6   : > { %p131_p4 = scmp.lt.s32.totalorder (!%p107_p3), %s305_s6, 1 }
   0x7   : > { %110 = sbr.rel (%p107_p3) target bundleno = 34 (0x22), region = 24 }
   0xc   : > { %s365_s6 = smov (!%p131_p4, %s305_s6), 1 }
   0xd   : > { %s266_s10 = smul.u32 72, %s365_s6  ;;  %s255_s14 = sshll.u32 %s365_s6, 3 }
   0xe   : > { %s145_s17 = scalar_lea.vmem %s359_s1, %s255_s14 }
   0xf   : > { %s138_s13 = scalar_lea.vmem %s358_s0, %s266_s10 }
  0x10   : > { %v146_v0 = vld [vmem:[%s138_s13] sm:$0xff]  ;;  %v256_v1 = vld [vmem:[%s138_s13 + $0x8] sm:$0xff]  ;;  %v257_v2 = vld [vmem:[%s138_s13 + $0x10] sm:$0xff] }
  0x11   : > { %v149_v3 = vmax.f32 %v146_v0, %v256_v1  ;;  %v258_v4 = vld [vmem:[%s138_s13 + $0x18] sm:$0xff]  ;;  %v259_v6 = vld [vmem:[%s138_s13 + $0x20] sm:$0xff]  ;;  %v260_v8 = vld [vmem:[%s138_s13 + $0x28] sm:$0xff] }
  0x12   : > { %v261_v10 = vld [vmem:[%s138_s13 + $0x30] sm:$0xff]  ;;  %v262_v12 = vld [vmem:[%s138_s13 + $0x38] sm:$0xff]  ;;  %v263_v14 = vld [vmem:[%s138_s13 + $0x40] sm:$0xff] }
  0x13   : > { %v152_v5 = vmax.f32 %v149_v3, %v257_v2 }
  0x15   : > { %v155_v7 = vmax.f32 %v152_v5, %v258_v4 }
  0x17   : > { %v158_v9 = vmax.f32 %v155_v7, %v259_v6 }
  0x19   : > { %v161_v11 = vmax.f32 %v158_v9, %v260_v8 }
  0x1b   : > { %v164_v13 = vmax.f32 %v161_v11, %v261_v10 }
  0x1d   : > { %v167_v15 = vmax.f32 %v164_v13, %v262_v12 }
  0x1f   : > { %v170_v16 = vmax.f32 %v167_v15, %v263_v14 }
  0x21   : > { %171 = vst [vmem:[%s145_s17] sm:$0xff] %v170_v16 }
  0x22 PF: > { %s11_s8 = sadd.s32 1, %s313_s8   ;;  %s360_s6 = smov %s309_s7 }
  0x23   : > { %p8_p5 = scmp.ge.s32.totalorder %s11_s8, 4   ;;  %s361_s7 = smov %s363_s9 }
  0x25   :  { %10 = sbr.rel (!%p8_p5) target bundleno = 2 (0x2), region = 62 }

// kernel: extractor_forward.10
= control target key start
LH: loop header
LB: loop body
LE: loop exit
PB: predicated region body
PF: predicated region fallthrough
CT: control target
= control target key end

     0   :  { %s980_s12 = smov 0   ;;  %s982_s13 = smov 0   ;;  %s1150_s0 = inlined_call_operand.vmem [shape: bf16[2,64,400], index: 0, kind: input, shape index: {}]   ;;  %s1151_s1 = inlined_call_operand.vmem [shape: bf16[400,128], index: 1, kind: input, shape index: {}]   ;;  %s1152_s2 = inlined_call_operand.vmem [shape: f32[1,128], index: 2, kind: input, shape index: {}]   ;;  %s1153_s3 = inlined_call_operand.vmem [shape: f32[2,64,128], index: 3, kind: output, shape index: {}]  }
   0x1   :  { %s984_s14 = smov 0  }
   0x2 LB: > { %s25_s15 = sadd.s32 1, %s953_s13  ;;  %p766_p0 = scmp.ge.s32.totalorder %s957_s14, 1  ;;  %s957_s14 = sphi %s984_s14, %s13_s14   ;;  %s953_s13 = sphi %s982_s13, %s1155_s13   ;;  %s949_s12 = sphi %s980_s12, %s1154_s12  }
   0x3   : > { %p27_p1 = scmp.ge.s32.totalorder %s25_s15, 2  ;;  %p159_p2 = scmp.lt.s32.totalorder %s957_s14, 3 }
   0x5   : > { %s1157_s15 = smov (%p27_p1, %s25_s15), 0  ;;  %p160_p3 = pnand %p766_p0, %p159_p2 }
   0x6   : > { %p193_p4 = scmp.lt.s32.totalorder (!%p160_p3), %s949_s12, 1 }
   0x7   : > { %163 = sbr.rel (%p160_p3) target bundleno = 278 (0x116), region = 32 }
   0xc   : > { %v886_v0 = vld [vmem:[%s1151_s1 + $0x78] sm:$0xff]   ;;  %v959_v1 = vmov 0   ;;  %v889_v4 = vld [vmem:[%s1151_s1 + $0x70] sm:$0xff]   ;;  %v892_v7 = vld [vmem:[%s1151_s1 + $0x68] sm:$0xff]   ;;  %s1159_s12 = smov (!%p193_p4, %s949_s12), 1  ;;  %vm513_vm0 = vcmask 130048  }
   0xd   : > { %591 = vmatprep.subr.bf16.mxu1 %v959_v1  ;;  %v887_v2 = vld [vmem:[%s1151_s1 + $0xb8] sm:$0xff]   ;;  %821 = vmatprep.subr.bf16.mxu0 %v886_v0  ;;  %v890_v5 = vld [vmem:[%s1151_s1 + $0xb0] sm:$0xff]   ;;  %v893_v8 = vld [vmem:[%s1151_s1 + $0xa8] sm:$0xff]   ;;  %s819_s27 = sshll.u32 %s1159_s12, 7  ;;  %s820_s26 = sshll.u32 %s1159_s12, 6 }
   0xe   : > { %v888_v3 = vld [vmem:[%s1151_s1 + $0x38] sm:$0xff]   ;;  %592 = vmatpush1.bf16.msra.mxu1 %v887_v2  ;;  %v891_v6 = vld [vmem:[%s1151_s1 + $0x30] sm:$0xff]   ;;  %v894_v9 = vld [vmem:[%s1151_s1 + $0x28] sm:$0xff]   ;;  %s1074_s9 = scalar_lea.vmem %s1150_s0, %s819_s27  ;;  %s1124_s29 = scalar_lea.vmem %s1153_s3, %s820_s26 }
   0xf   : > { %822 = vmatpush3.bf16.msra.mxu0 %v888_v3  ;;  %593 = vmatprep.subr.bf16.mxu1 %v959_v1  ;;  %v895_v10 = vld [vmem:[%s1151_s1 + $0x60] sm:$0xff]   ;;  %v898_v13 = vld [vmem:[%s1151_s1 + $0x58] sm:$0xff]   ;;  %v901_v16 = vld [vmem:[%s1151_s1 + $0x50] sm:$0xff]  }
  0x10   : > { %823 = vmatprep.subr.bf16.mxu0 %v889_v4  ;;  %v896_v11 = vld [vmem:[%s1151_s1 + $0xa0] sm:$0xff]   ;;  %v899_v14 = vld [vmem:[%s1151_s1 + $0x98] sm:$0xff]   ;;  %v902_v17 = vld [vmem:[%s1151_s1 + $0x90] sm:$0xff]  }
  0x11   : > { %v897_v12 = vld [vmem:[%s1151_s1 + $0x20] sm:$0xff]   ;;  %v900_v15 = vld [vmem:[%s1151_s1 + $0x18] sm:$0xff]   ;;  %v903_v18 = vld [vmem:[%s1151_s1 + $0x10] sm:$0xff]  }
  0x12   : > { %594 = vmatpush1.bf16.msra.mxu1 %v890_v5  ;;  %v904_v19 = vld [vmem:[%s1151_s1 + $0x48] sm:$0xff]   ;;  %v907_v22 = vld [vmem:[%s1151_s1 + $0x40] sm:$0xff]  }
  0x13   : > { %824 = vmatpush3.bf16.msra.mxu0 %v891_v6  ;;  %595 = vmatprep.subr.bf16.mxu1 %v959_v1  ;;  %v905_v20 = vld [vmem:[%s1151_s1 + $0x88] sm:$0xff]   ;;  %v912_v23 = vld [vmem:[%s1074_s9 + $0x4] ss:$16 sps:$4 sm:$0xff]   ;;  %v910_v27 = vld [vmem:[%s1074_s9] ss:$16 sps:$4 sm:$0xff]  }
  0x14   : > { %825 = vmatprep.subr.bf16.mxu0 %v892_v7  ;;  %v906_v21 = vld [vmem:[%s1151_s1 + $0x8] sm:$0xff]   ;;  %v908_v24 = vld [vmem:[%s1151_s1 + $0x80] sm:$0xff]   ;;  %558 = vmatprep.mubr.bf16.mxu0 %v912_v23 }
  0x15   : > { %v916_v25 = vld [vmem:[%s1074_s9 + $0xc] ss:$16 sps:$4 sm:$0xff]   ;;  %v909_v26 = vld [vmem:[%s1151_s1] sm:$0xff]   ;;  %v914_v30 = vld [vmem:[%s1074_s9 + $0x8] ss:$16 sps:$4 sm:$0xff]  }
  0x16   : > { %596 = vmatpush1.bf16.msra.mxu1 %v893_v8  ;;  %813 = vmatprep.mubr.msk.bf16.mxu1 %vm513_vm0, %v916_v25  ;;  %v913_v28 = vld [vmem:[%s1151_s1 + $0xc0] sm:$0xff]   ;;  %v920_v31 = vld [vmem:[%s1074_s9 + $0x2c] ss:$16 sps:$4 sm:$0xff]   ;;  %v922_v34 = vld [vmem:[%s1074_s9 + $0x28] ss:$16 sps:$4 sm:$0xff]  }
  0x17   : > { %826 = vmatpush3.bf16.msra.mxu0 %v894_v9  ;;  %597 = vmatprep.subr.bf16.mxu1 %v959_v1  ;;  %v917_v29 = vld [vmem:[%s1074_s9 + $0x24] ss:$16 sps:$4 sm:$0xff]   ;;  %v919_v32 = vld [vmem:[%s1074_s9 + $0x20] ss:$16 sps:$4 sm:$0xff]   ;;  %v926_v35 = vld [vmem:[%s1074_s9 + $0x4c] ss:$16 sps:$4 sm:$0xff]  }
  0x18   : > { %827 = vmatprep.subr.bf16.mxu0 %v895_v10  ;;  %v923_v33 = vld [vmem:[%s1074_s9 + $0x44] ss:$16 sps:$4 sm:$0xff]   ;;  %v925_v36 = vld [vmem:[%s1074_s9 + $0x40] ss:$16 sps:$4 sm:$0xff]   ;;  %v928_v38 = vld [vmem:[%s1074_s9 + $0x48] ss:$16 sps:$4 sm:$0xff]  }
  0x19   : > { %v929_v37 = vld [vmem:[%s1074_s9 + $0x64] ss:$16 sps:$4 sm:$0xff]   ;;  %v932_v39 = vld [vmem:[%s1074_s9 + $0x6c] ss:$16 sps:$4 sm:$0xff]   ;;  %v931_v40 = vld [vmem:[%s1074_s9 + $0x60] ss:$16 sps:$4 sm:$0xff]  }
  0x1a   : > { %598 = vmatpush1.bf16.msra.mxu1 %v896_v11  ;;  %v934_v41 = vld [vmem:[%s1074_s9 + $0x68] ss:$16 sps:$4 sm:$0xff]   ;;  %v1117_v44 = vld [vmem:[%s1152_s2] ss:$0 sm:$0xff] }
  0x1b   : > { %828 = vmatpush3.bf16.msra.mxu0 %v897_v12  ;;  %599 = vmatprep.subr.bf16.mxu1 %v959_v1 }
  0x1c   : > { %829 = vmatprep.subr.bf16.mxu0 %v898_v13 }
  0x1e   : > { %600 = vmatpush1.bf16.msra.mxu1 %v899_v14 }
  0x1f   : > { %830 = vmatpush3.bf16.msra.mxu0 %v900_v15  ;;  %601 = vmatprep.subr.bf16.mxu1 %v959_v1 }
  0x20   : > { %831 = vmatprep.subr.bf16.mxu0 %v901_v16 }
  0x22   : > { %602 = vmatpush1.bf16.msra.mxu1 %v902_v17 }
  0x23   : > { %832 = vmatpush3.bf16.msra.mxu0 %v903_v18  ;;  %603 = vmatprep.subr.bf16.mxu1 %v959_v1 }
  0x24   : > { %833 = vmatprep.subr.bf16.mxu0 %v904_v19 }
  0x26   : > { %604 = vmatpush1.bf16.msra.mxu1 %v905_v20 }
  0x27   : > { %834 = vmatpush3.bf16.msra.mxu0 %v906_v21  ;;  %605 = vmatprep.subr.bf16.mxu1 %v959_v1 }
  0x28   : > { %835 = vmatprep.subr.bf16.mxu0 %v907_v22 }
  0x2a   : > { %606 = vmatpush1.bf16.msra.mxu1 %v908_v24 }
  0x2b   : > { %836 = vmatpush3.bf16.msra.mxu0 %v909_v26  ;;  %621 = vmatprep.subr.bf16.mxu1 %v959_v1 }
  0x2e   : > { %559 = vmatmul.mubr.bf16.vlgmr.msra.gmra.mxu0 %v910_v27  ;;  %622 = vmatpush2.bf16.msra.mxu1 %v913_v28 }
  0x2f   : > { %566 = vmatprep.mubr.bf16.mxu0 %v917_v29 }
  0x31   : > { %624 = vmatmul.mubr.bf16.vlgmr.msra.gmra.mxu1 %v914_v30 }
  0x32   : > { %814 = vmatprep.mubr.msk.bf16.mxu1 %vm513_vm0, %v920_v31 }
  0x36   : > { %567 = vmatmul.mubr.bf16.gmra.mxu0 %v919_v32 }
  0x37   : > { %574 = vmatprep.mubr.bf16.mxu0 %v923_v33 }
  0x39   : > { %632 = vmatmul.mubr.bf16.gmra.mxu1 %v922_v34 }
  0x3a   : > { %815 = vmatprep.mubr.msk.bf16.mxu1 %vm513_vm0, %v926_v35 }
  0x3e   : > { %575 = vmatmul.mubr.bf16.gmra.mxu0 %v925_v36 }
  0x3f   : > { %582 = vmatprep.mubr.bf16.mxu0 %v929_v37 }
  0x41   : > { %640 = vmatmul.mubr.bf16.gmra.mxu1 %v928_v38 }
  0x42   : > { %816 = vmatprep.mubr.msk.bf16.mxu1 %vm513_vm0, %v932_v39 }
  0x46   : > { %583 = vmatmul.mubr.bf16.gmra.mxu0 %v931_v40 }
  0x49   : > { %648 = vmatmul.mubr.bf16.gmra.mxu1 %v934_v41 }
  0xee   : > { %v837_v42 = vpop.f32.mrf.mxu0 }
  0xf0   : > { %v838_v43 = vpop.f32.mrf.mxu0 }
  0xf1   : > { %v839_v45 = vadd.f32 %v838_v43, %v837_v42  ;;  %v625_v46 = vpop.f32.mrf.mxu1 }
  0xf2   : > { %v840_v47 = vpop.f32.mrf.mxu0 }
  0xf3   : > { %v561_v48 = vadd.f32 %v839_v45, %v1117_v44  ;;  %v627_v49 = vpop.f32.mrf.mxu1 }
  0xf4   : > { %v841_v50 = vpop.f32.mrf.mxu0 }
  0xf5   : > { %v626_v51 = vadd.f32 %v625_v46, %v561_v48  ;;  %v842_v52 = vadd.f32 %v841_v50, %v840_v47  ;;  %v628_v53 = vpop.f32.mrf.mxu1 }
  0xf6   : > { %v843_v54 = vpop.f32.mrf.mxu0 }
  0xf7   : > { %v656_v55 = vmax.f32 %v626_v51, 0.0  ;;  %v564_v56 = vadd.f32 %v842_v52, %v1117_v44  ;;  %v630_v57 = vpop.f32.mrf.mxu1 }
  0xf8   : > { %v844_v58 = vpop.f32.mrf.mxu0 }
  0xf9   : > { %664 = vst [vmem:[%s1124_s29] sm:$0xff] %v656_v55  ;;  %v629_v59 = vadd.f32 %v628_v53, %v564_v56  ;;  %v845_v60 = vadd.f32 %v844_v58, %v843_v54  ;;  %v633_v61 = vpop.f32.mrf.mxu1 }
  0xfa   : > { %v846_v62 = vpop.f32.mrf.mxu0 }
  0xfb   : > { %v657_v63 = vmax.f32 %v629_v59, 0.0  ;;  %v569_v0 = vadd.f32 %v845_v60, %v1117_v44  ;;  %v635_v1 = vpop.f32.mrf.mxu1 }
  0xfc   : > { %v847_v2 = vpop.f32.mrf.mxu0 }
  0xfd   : > { %665 = vst [vmem:[%s1124_s29 + $0x8] sm:$0xff] %v657_v63  ;;  %v634_v3 = vadd.f32 %v633_v61, %v569_v0  ;;  %v848_v4 = vadd.f32 %v847_v2, %v846_v62  ;;  %v636_v5 = vpop.f32.mrf.mxu1 }
  0xfe   : > { %v849_v6 = vpop.f32.mrf.mxu0 }
  0xff   : > { %v658_v7 = vmax.f32 %v634_v3, 0.0  ;;  %v572_v8 = vadd.f32 %v848_v4, %v1117_v44  ;;  %v638_v9 = vpop.f32.mrf.mxu1 }
 0x100   : > { %v850_v10 = vpop.f32.mrf.mxu0 }
 0x101   : > { %666 = vst [vmem:[%s1124_s29 + $0x10] sm:$0xff] %v658_v7  ;;  %v637_v11 = vadd.f32 %v636_v5, %v572_v8  ;;  %v851_v12 = vadd.f32 %v850_v10, %v849_v6  ;;  %v641_v13 = vpop.f32.mrf.mxu1 }
 0x102   : > { %v852_v14 = vpop.f32.mrf.mxu0 }
 0x103   : > { %v659_v15 = vmax.f32 %v637_v11, 0.0  ;;  %v577_v16 = vadd.f32 %v851_v12, %v1117_v44  ;;  %v643_v17 = vpop.f32.mrf.mxu1 }
 0x104   : > { %v853_v18 = vpop.f32.mrf.mxu0 }
 0x105   : > { %667 = vst [vmem:[%s1124_s29 + $0x18] sm:$0xff] %v659_v15  ;;  %v642_v19 = vadd.f32 %v641_v13, %v577_v16  ;;  %v854_v20 = vadd.f32 %v853_v18, %v852_v14  ;;  %v644_v21 = vpop.f32.mrf.mxu1 }
 0x106   : > { %v855_v22 = vpop.f32.mrf.mxu0 }
 0x107   : > { %v660_v23 = vmax.f32 %v642_v19, 0.0  ;;  %v580_v24 = vadd.f32 %v854_v20, %v1117_v44  ;;  %v646_v25 = vpop.f32.mrf.mxu1 }
 0x108   : > { %v856_v26 = vpop.f32.mrf.mxu0 }
 0x109   : > { %668 = vst [vmem:[%s1124_s29 + $0x20] sm:$0xff] %v660_v23  ;;  %v645_v27 = vadd.f32 %v644_v21, %v580_v24  ;;  %v857_v28 = vadd.f32 %v856_v26, %v855_v22  ;;  %v649_v29 = vpop.f32.mrf.mxu1 }
 0x10a   : > { %v858_v30 = vpop.f32.mrf.mxu0 }
 0x10b   : > { %v661_v31 = vmax.f32 %v645_v27, 0.0  ;;  %v585_v32 = vadd.f32 %v857_v28, %v1117_v44  ;;  %v651_v33 = vpop.f32.mrf.mxu1 }
 0x10c   : > { %v859_v34 = vpop.f32.mrf.mxu0 }
 0x10d   : > { %669 = vst [vmem:[%s1124_s29 + $0x28] sm:$0xff] %v661_v31  ;;  %v650_v35 = vadd.f32 %v649_v29, %v585_v32  ;;  %v860_v36 = vadd.f32 %v859_v34, %v858_v30  ;;  %v652_v37 = vpop.f32.mrf.mxu1 }
 0x10f   : > { %v662_v38 = vmax.f32 %v650_v35, 0.0  ;;  %v588_v39 = vadd.f32 %v860_v36, %v1117_v44  ;;  %v654_v40 = vpop.f32.mrf.mxu1 }
 0x111   : > { %670 = vst [vmem:[%s1124_s29 + $0x30] sm:$0xff] %v662_v38  ;;  %v653_v41 = vadd.f32 %v652_v37, %v588_v39 }
 0x113   : > { %v663_v42 = vmax.f32 %v653_v41, 0.0 }
 0x115   : > { %671 = vst [vmem:[%s1124_s29 + $0x38] sm:$0xff] %v663_v42 }
 0x116 PF: > { %s13_s14 = sadd.s32 1, %s957_s14   ;;  %s1154_s12 = smov %s953_s13 }
 0x117   : > { %p10_p5 = scmp.ge.s32.totalorder %s13_s14, 4   ;;  %s1155_s13 = smov %s1157_s15 }
 0x119   :  { %12 = sbr.rel (!%p10_p5) target bundleno = 2 (0x2), region = 62 }

// kernel: extractor_forward.12
= control target key start
LH: loop header
LB: loop body
LE: loop exit
PB: predicated region body
PF: predicated region fallthrough
CT: control target
= control target key end

     0   :  { %s726_s12 = smov 0   ;;  %s728_s13 = smov 0   ;;  %s820_s0 = inlined_call_operand.vmem [shape: bf16[2,16,288], index: 0, kind: input, shape index: {}]   ;;  %s821_s1 = inlined_call_operand.vmem [shape: bf16[288,128], index: 1, kind: input, shape index: {}]   ;;  %s822_s2 = inlined_call_operand.vmem [shape: f32[1,128], index: 2, kind: input, shape index: {}]   ;;  %s823_s3 = inlined_call_operand.vmem [shape: f32[2,16,128], index: 3, kind: output, shape index: {}]  }
   0x1   :  { %s730_s14 = smov 0  }
   0x2 LB: > { %s25_s15 = sadd.s32 1, %s698_s13  ;;  %p568_p0 = scmp.ge.s32.totalorder %s702_s14, 1  ;;  %s702_s14 = sphi %s730_s14, %s13_s14   ;;  %s698_s13 = sphi %s728_s13, %s825_s13   ;;  %s694_s12 = sphi %s726_s12, %s824_s12  }
   0x3   : > { %p27_p1 = scmp.ge.s32.totalorder %s25_s15, 2  ;;  %p159_p2 = scmp.lt.s32.totalorder %s702_s14, 3 }
   0x5   : > { %s827_s15 = smov (%p27_p1, %s25_s15), 0  ;;  %p160_p3 = pnand %p568_p0, %p159_p2 }
   0x6   : > { %p193_p4 = scmp.lt.s32.totalorder (!%p160_p3), %s694_s12, 1 }
   0x7   : > { %163 = sbr.rel (%p160_p3) target bundleno = 253 (0xfd), region = 32 }
   0xc   : > { %v658_v0 = vld [vmem:[%s821_s1 + $0x78] sm:$0xff]   ;;  %v704_v2 = vmov 0.0   ;;  %v660_v3 = vld [vmem:[%s821_s1 + $0x70] sm:$0xff]   ;;  %vm705_vm0 = vmmov 0   ;;  %v662_v5 = vld [vmem:[%s821_s1 + $0x68] sm:$0xff]   ;;  %s829_s12 = smov (!%p193_p4, %s694_s12), 1 }
   0xd   : > { %v659_v1 = vld [vmem:[%s821_s1 + $0x38] sm:$0xff]   ;;  %623 = vmatprep.subr.bf16.mxu1 %v704_v2  ;;  %598 = vmatprep.subr.bf16.mxu0 %v658_v0  ;;  %v661_v4 = vld [vmem:[%s821_s1 + $0x30] sm:$0xff]   ;;  %v663_v6 = vld [vmem:[%s821_s1 + $0x28] sm:$0xff]   ;;  %s631_s7 = smul.u32 24, %s829_s12  ;;  %vm384_vm1 = vcmask 261120   ;;  %s597_s8 = sshll.u32 %s829_s12, 4 }
   0xe   : > { %599 = vmatpush3.bf16.msra.mxu0 %v659_v1  ;;  %627 = vmatprep.mubr.msk.bf16.mxu1 %vm705_vm0, %v704_v2  ;;  %v664_v7 = vld [vmem:[%s821_s1 + $0x60] sm:$0xff]   ;;  %v666_v9 = vld [vmem:[%s821_s1 + $0x58] sm:$0xff]   ;;  %v672_v10 = vld [vmem:[%s821_s1 + $0x88] sm:$0xff]   ;;  %s211_s11 = scalar_lea.vmem %s823_s3, %s597_s8 }
   0xf   : > { %600 = vmatprep.subr.bf16.mxu0 %v660_v3  ;;  %v665_v8 = vld [vmem:[%s821_s1 + $0x20] sm:$0xff]   ;;  %v667_v11 = vld [vmem:[%s821_s1 + $0x18] sm:$0xff]   ;;  %v668_v12 = vld [vmem:[%s821_s1 + $0x50] sm:$0xff]   ;;  %624 = vmatpush3.bf16.msra.mxu1 %v672_v10  ;;  %s201_s20 = scalar_lea.vmem %s820_s0, %s631_s7 }
  0x10   : > { %625 = vmatprep.subr.bf16.mxu1 %v704_v2  ;;  %v675_v13 = vld [vmem:[%s821_s1 + $0x80] sm:$0xff]   ;;  %v669_v14 = vld [vmem:[%s821_s1 + $0x10] sm:$0xff]   ;;  %v670_v16 = vld [vmem:[%s821_s1 + $0x48] sm:$0xff]  }
  0x11   : > { %v678_v15 = vld [vmem:[%s201_s20 + $0x4] ss:$12 sps:$4 sm:$0xff]   ;;  %v679_v17 = vld [vmem:[%s201_s20 + $0x8] ss:$12 sps:$4 sm:$0xff]   ;;  %v676_v21 = vld [vmem:[%s201_s20] ss:$12 sps:$4 sm:$0xff]  }
  0x12   : > { %601 = vmatpush3.bf16.msra.mxu0 %v661_v4  ;;  %420 = vmatprep.mubr.bf16.mxu0 %v678_v15  ;;  %v671_v18 = vld [vmem:[%s821_s1 + $0x8] sm:$0xff]   ;;  %v673_v19 = vld [vmem:[%s821_s1 + $0x40] sm:$0xff]  }
  0x13   : > { %602 = vmatprep.subr.bf16.mxu0 %v662_v5  ;;  %626 = vmatpush3.bf16.msra.mxu1 %v675_v13  ;;  %v674_v20 = vld [vmem:[%s821_s1] sm:$0xff]  }
  0x14   : > { %v572_v27 = vld [vmem:[%s822_s2] ss:$0 sm:$0xff] }
  0x16   : > { %603 = vmatpush3.bf16.msra.mxu0 %v663_v6  ;;  %628 = vmatmul.mubr.msk.bf16.vlgmr.msra.gmra.mxu1 %vm384_vm1, %v679_v17 }
  0x17   : > { %604 = vmatprep.subr.bf16.mxu0 %v664_v7 }
  0x1a   : > { %605 = vmatpush3.bf16.msra.mxu0 %v665_v8 }
  0x1b   : > { %606 = vmatprep.subr.bf16.mxu0 %v666_v9 }
  0x1e   : > { %607 = vmatpush3.bf16.msra.mxu0 %v667_v11 }
  0x1f   : > { %608 = vmatprep.subr.bf16.mxu0 %v668_v12 }
  0x22   : > { %609 = vmatpush3.bf16.msra.mxu0 %v669_v14 }
  0x23   : > { %610 = vmatprep.subr.bf16.mxu0 %v670_v16 }
  0x26   : > { %611 = vmatpush3.bf16.msra.mxu0 %v671_v18 }
  0x27   : > { %612 = vmatprep.subr.bf16.mxu0 %v673_v19 }
  0x2a   : > { %613 = vmatpush3.bf16.msra.mxu0 %v674_v20 }
  0x2d   : > { %421 = vmatmul.mubr.bf16.vlgmr.msra.gmra.mxu0 %v676_v21 }
  0xd6   : > { %v463_v22 = vpop.f32.mrf.mxu1 }
  0xd8   : > { %v629_v23 = vpop.f32.mrf.mxu1 }
  0xda   : > { %v466_v24 = vpop.f32.mrf.mxu1 }
  0xdc   : > { %v630_v25 = vpop.f32.mrf.mxu1 }
  0xed   : > { %v614_v26 = vpop.f32.mrf.mxu0 }
  0xef   : > { %v615_v28 = vpop.f32.mrf.mxu0 }
  0xf0   : > { %v616_v29 = vadd.f32 %v615_v28, %v614_v26 }
  0xf1   : > { %v617_v30 = vpop.f32.mrf.mxu0 }
  0xf2   : > { %v423_v31 = vadd.f32 %v616_v29, %v572_v27 }
  0xf3   : > { %v618_v32 = vpop.f32.mrf.mxu0 }
  0xf4   : > { %v464_v33 = vadd.f32 %v463_v22, %v423_v31  ;;  %v619_v34 = vadd.f32 %v618_v32, %v617_v30 }
  0xf6   : > { %v470_v35 = vmax.f32 %v464_v33, 0.0  ;;  %v426_v36 = vadd.f32 %v619_v34, %v572_v27 }
  0xf8   : > { %472 = vst [vmem:[%s211_s11] sm:$0xff] %v470_v35  ;;  %v467_v37 = vadd.f32 %v466_v24, %v426_v36 }
  0xfa   : > { %v471_v38 = vmax.f32 %v467_v37, 0.0 }
  0xfc   : > { %473 = vst [vmem:[%s211_s11 + $0x8] sm:$0xff] %v471_v38 }
  0xfd PF: > { %s13_s14 = sadd.s32 1, %s702_s14   ;;  %s824_s12 = smov %s698_s13 }
  0xfe   : > { %p10_p5 = scmp.ge.s32.totalorder %s13_s14, 4   ;;  %s825_s13 = smov %s827_s15 }
 0x100   :  { %12 = sbr.rel (!%p10_p5) target bundleno = 2 (0x2), region = 62 }

// kernel: extractor_forward.13
= control target key start
LH: loop header
LB: loop body
LE: loop exit
PB: predicated region body
PF: predicated region fallthrough
CT: control target
= control target key end

     0   :  { %s811_s12 = smov 0   ;;  %s813_s13 = smov 0   ;;  %s947_s0 = inlined_call_operand.vmem [shape: bf16[2,16,432], index: 0, kind: input, shape index: {}]   ;;  %s948_s1 = inlined_call_operand.vmem [shape: bf16[432,128], index: 1, kind: input, shape index: {}]   ;;  %s949_s2 = inlined_call_operand.vmem [shape: f32[1,128], index: 2, kind: input, shape index: {}]   ;;  %s950_s3 = inlined_call_operand.vmem [shape: f32[2,16,128], index: 3, kind: output, shape index: {}]  }
   0x1   :  { %s815_s14 = smov 0  }
   0x2 LB: > { %s25_s15 = sadd.s32 1, %s784_s13  ;;  %p644_p0 = scmp.ge.s32.totalorder %s788_s14, 1  ;;  %s788_s14 = sphi %s815_s14, %s13_s14   ;;  %s784_s13 = sphi %s813_s13, %s952_s13   ;;  %s780_s12 = sphi %s811_s12, %s951_s12  }
   0x3   : > { %p27_p1 = scmp.ge.s32.totalorder %s25_s15, 2  ;;  %p159_p2 = scmp.lt.s32.totalorder %s788_s14, 3 }
   0x5   : > { %s954_s15 = smov (%p27_p1, %s25_s15), 0  ;;  %p160_p3 = pnand %p644_p0, %p159_p2 }
   0x6   : > { %p193_p4 = scmp.lt.s32.totalorder (!%p160_p3), %s780_s12, 1 }
   0x7   : > { %163 = sbr.rel (%p160_p3) target bundleno = 259 (0x103), region = 32 }
   0xc   : > { %v733_v0 = vld [vmem:[%s948_s1 + $0x78] sm:$0xff]   ;;  %v790_v1 = vmov 0   ;;  %v736_v4 = vld [vmem:[%s948_s1 + $0x70] sm:$0xff]   ;;  %v739_v7 = vld [vmem:[%s948_s1 + $0x68] sm:$0xff]   ;;  %s956_s12 = smov (!%p193_p4, %s780_s12), 1  ;;  %vm460_vm0 = vcmask 392192  }
   0xd   : > { %505 = vmatprep.subr.bf16.mxu1 %v790_v1  ;;  %v734_v2 = vld [vmem:[%s948_s1 + $0xb8] sm:$0xff]   ;;  %686 = vmatprep.subr.bf16.mxu0 %v733_v0  ;;  %v737_v5 = vld [vmem:[%s948_s1 + $0xb0] sm:$0xff]   ;;  %v740_v8 = vld [vmem:[%s948_s1 + $0xa8] sm:$0xff]   ;;  %s684_s27 = sshll.u32 %s956_s12, 5  ;;  %s685_s30 = sshll.u32 %s956_s12, 4 }
   0xe   : > { %v735_v3 = vld [vmem:[%s948_s1 + $0x38] sm:$0xff]   ;;  %506 = vmatpush1.bf16.msra.mxu1 %v734_v2  ;;  %v738_v6 = vld [vmem:[%s948_s1 + $0x30] sm:$0xff]   ;;  %v741_v9 = vld [vmem:[%s948_s1 + $0x28] sm:$0xff]   ;;  %s201_s9 = scalar_lea.vmem %s947_s0, %s684_s27  ;;  %s211_s6 = scalar_lea.vmem %s950_s3, %s685_s30 }
   0xf   : > { %687 = vmatpush3.bf16.msra.mxu0 %v735_v3  ;;  %507 = vmatprep.subr.bf16.mxu1 %v790_v1  ;;  %v742_v10 = vld [vmem:[%s948_s1 + $0x60] sm:$0xff]   ;;  %v745_v13 = vld [vmem:[%s948_s1 + $0x58] sm:$0xff]   ;;  %v748_v16 = vld [vmem:[%s948_s1 + $0x50] sm:$0xff]  }
  0x10   : > { %688 = vmatprep.subr.bf16.mxu0 %v736_v4  ;;  %v743_v11 = vld [vmem:[%s948_s1 + $0xa0] sm:$0xff]   ;;  %v746_v14 = vld [vmem:[%s948_s1 + $0x98] sm:$0xff]   ;;  %v749_v17 = vld [vmem:[%s948_s1 + $0x90] sm:$0xff]  }
  0x11   : > { %v744_v12 = vld [vmem:[%s948_s1 + $0x20] sm:$0xff]   ;;  %v747_v15 = vld [vmem:[%s948_s1 + $0x18] sm:$0xff]   ;;  %v750_v18 = vld [vmem:[%s948_s1 + $0x10] sm:$0xff]  }
  0x12   : > { %508 = vmatpush1.bf16.msra.mxu1 %v737_v5  ;;  %v751_v19 = vld [vmem:[%s948_s1 + $0x48] sm:$0xff]   ;;  %v754_v22 = vld [vmem:[%s948_s1 + $0x40] sm:$0xff]   ;;  %v760_v28 = vld [vmem:[%s948_s1 + $0xd0] sm:$0xff]  }
  0x13   : > { %689 = vmatpush3.bf16.msra.mxu0 %v738_v6  ;;  %509 = vmatprep.subr.bf16.mxu1 %v790_v1  ;;  %v752_v20 = vld [vmem:[%s948_s1 + $0x88] sm:$0xff]   ;;  %v759_v23 = vld [vmem:[%s201_s9 + $0x4] ss:$16 sps:$4 sm:$0xff]   ;;  %v757_v27 = vld [vmem:[%s201_s9] ss:$16 sps:$4 sm:$0xff]  }
  0x14   : > { %690 = vmatprep.subr.bf16.mxu0 %v739_v7  ;;  %v753_v21 = vld [vmem:[%s948_s1 + $0x8] sm:$0xff]   ;;  %v755_v24 = vld [vmem:[%s948_s1 + $0x80] sm:$0xff]   ;;  %496 = vmatprep.mubr.bf16.mxu0 %v759_v23 }
  0x15   : > { %v756_v25 = vld [vmem:[%s948_s1] sm:$0xff]   ;;  %v765_v26 = vld [vmem:[%s201_s9 + $0xc] ss:$16 sps:$4 sm:$0xff]   ;;  %v763_v31 = vld [vmem:[%s201_s9 + $0x8] ss:$16 sps:$4 sm:$0xff]  }
  0x16   : > { %510 = vmatpush1.bf16.msra.mxu1 %v740_v8  ;;  %681 = vmatprep.mubr.msk.bf16.mxu1 %vm460_vm0, %v765_v26  ;;  %v761_v29 = vld [vmem:[%s948_s1 + $0xc8] sm:$0xff]   ;;  %v762_v30 = vld [vmem:[%s948_s1 + $0xc0] sm:$0xff]  }
  0x17   : > { %691 = vmatpush3.bf16.msra.mxu0 %v741_v9  ;;  %511 = vmatprep.subr.bf16.mxu1 %v790_v1  ;;  %v649_v37 = vld [vmem:[%s949_s2] ss:$0 sm:$0xff] }
  0x18   : > { %692 = vmatprep.subr.bf16.mxu0 %v742_v10 }
  0x1a   : > { %512 = vmatpush1.bf16.msra.mxu1 %v743_v11 }
  0x1b   : > { %693 = vmatpush3.bf16.msra.mxu0 %v744_v12  ;;  %513 = vmatprep.subr.bf16.mxu1 %v790_v1 }
  0x1c   : > { %694 = vmatprep.subr.bf16.mxu0 %v745_v13 }
  0x1e   : > { %514 = vmatpush1.bf16.msra.mxu1 %v746_v14 }
  0x1f   : > { %695 = vmatpush3.bf16.msra.mxu0 %v747_v15  ;;  %515 = vmatprep.subr.bf16.mxu1 %v790_v1 }
  0x20   : > { %696 = vmatprep.subr.bf16.mxu0 %v748_v16 }
  0x22   : > { %516 = vmatpush1.bf16.msra.mxu1 %v749_v17 }
  0x23   : > { %697 = vmatpush3.bf16.msra.mxu0 %v750_v18  ;;  %517 = vmatprep.subr.bf16.mxu1 %v790_v1 }
  0x24   : > { %698 = vmatprep.subr.bf16.mxu0 %v751_v19 }
  0x26   : > { %518 = vmatpush1.bf16.msra.mxu1 %v752_v20 }
  0x27   : > { %699 = vmatpush3.bf16.msra.mxu0 %v753_v21  ;;  %519 = vmatprep.subr.bf16.mxu1 %v790_v1 }
  0x28   : > { %700 = vmatprep.subr.bf16.mxu0 %v754_v22 }
  0x2a   : > { %520 = vmatpush1.bf16.msra.mxu1 %v755_v24 }
  0x2b   : > { %701 = vmatpush3.bf16.msra.mxu0 %v756_v25  ;;  %531 = vmatprep.subr.bf16.mxu1 %v790_v1 }
  0x2e   : > { %497 = vmatmul.mubr.bf16.vlgmr.msra.gmra.mxu0 %v757_v27  ;;  %532 = vmatpush2.bf16.msra.mxu1 %v760_v28 }
  0x2f   : > { %533 = vmatprep.subr.bf16.mxu1 %v790_v1 }
  0x32   : > { %534 = vmatpush2.bf16.msra.mxu1 %v761_v29 }
  0x33   : > { %535 = vmatprep.subr.bf16.mxu1 %v790_v1 }
  0x36   : > { %536 = vmatpush2.bf16.msra.mxu1 %v762_v30 }
  0x39   : > { %538 = vmatmul.mubr.bf16.vlgmr.msra.gmra.mxu1 %v763_v31 }
  0xee   : > { %v702_v32 = vpop.f32.mrf.mxu0 }
  0xf0   : > { %v703_v33 = vpop.f32.mrf.mxu0 }
  0xf1   : > { %v704_v35 = vadd.f32 %v703_v33, %v702_v32 }
  0xf2   : > { %v705_v34 = vpop.f32.mrf.mxu0 }
  0xf3   : > { %v499_v39 = vadd.f32 %v704_v35, %v649_v37 }
  0xf4   : > { %v706_v36 = vpop.f32.mrf.mxu0 }
  0xf5   : > { %v707_v38 = vadd.f32 %v706_v36, %v705_v34 }
  0xf7   : > { %v502_v44 = vadd.f32 %v707_v38, %v649_v37 }
  0xf9   : > { %v539_v40 = vpop.f32.mrf.mxu1 }
  0xfa   : > { %v540_v41 = vadd.f32 %v539_v40, %v499_v39 }
  0xfb   : > { %v541_v42 = vpop.f32.mrf.mxu1 }
  0xfc   : > { %v546_v43 = vmax.f32 %v540_v41, 0.0 }
  0xfd   : > { %v542_v45 = vpop.f32.mrf.mxu1 }
  0xfe   : > { %548 = vst [vmem:[%s211_s6] sm:$0xff] %v546_v43  ;;  %v543_v46 = vadd.f32 %v542_v45, %v502_v44 }
  0xff   : > { %v544_v47 = vpop.f32.mrf.mxu1 }
 0x100   : > { %v547_v48 = vmax.f32 %v543_v46, 0.0 }
 0x102   : > { %549 = vst [vmem:[%s211_s6 + $0x8] sm:$0xff] %v547_v48 }
 0x103 PF: > { %s13_s14 = sadd.s32 1, %s788_s14   ;;  %s951_s12 = smov %s784_s13 }
 0x104   : > { %p10_p5 = scmp.ge.s32.totalorder %s13_s14, 4   ;;  %s952_s13 = smov %s954_s15 }
 0x106   :  { %12 = sbr.rel (!%p10_p5) target bundleno = 2 (0x2), region = 62 }

</bundles_post_ra>
